<compile_context>
chip_gen: v7x
topology: tpu7x:2x2x1
jax: 0.10.0
libtpu: 0.0.40
codegen_flags: <defaults>
</compile_context>

<pallas_src>
import functools

import jax
import jax.numpy as jnp
from jax.experimental import pallas as pl
from jax.experimental.pallas import tpu as pltpu

HIDDEN = 512   # Attention2d.conv1 output channels (fixed in the module)
LANE = 128


def _round_up(x, m):
    return ((x + m - 1) // m) * m


def _delf_head_kernel(x_ref, w1t_ref, b1_ref, w2_ref, b2_ref, wl_ref, bl_ref,
                      o_ref, acc_ref, *, s_valid, s_tile):
    """One (batch, S-tile) grid step of the DELF attention head.

    x_ref  : (1, C, s_tile) f32   feature tile (channels on sublanes)
    w1t_ref: (512, C)       bf16  Attention2d.conv1 weight, pre-transposed
    b1_ref : (512, 1)       f32
    w2_ref : (512, 1)       f32   Attention2d.conv2 weight (column)
    b2_ref : (1, 1)         f32
    wl_ref : (C, ncls_p)    bf16  logits conv weight (ncls padded to 128)
    bl_ref : (1, ncls_p)    f32
    o_ref  : (1, 1, ncls_p) f32
    acc_ref: (1, C)         f32   running attention-weighted feature (scratch)
    """
    s_idx = pl.program_id(1)

    @pl.when(s_idx == 0)
    def _init():
        acc_ref[...] = jnp.zeros_like(acc_ref)

    x = x_ref[0]                                            # (C, s_tile) f32

    # ---- Attention2d conv1 + ReLU: MXU matmul, bf16 in / f32 accumulate ----
    h = jax.lax.dot_general(
        w1t_ref[...], x.astype(jnp.bfloat16),
        dimension_numbers=(((1,), (0,)), ((), ())),
        preferred_element_type=jnp.float32)                 # (512, s_tile)
    h = jnp.maximum(h + b1_ref[...], 0.0)

    # ---- conv2 (512 -> 1) as VPU multiply + sublane reduce (MXU stays free) ----
    s_raw = jnp.sum(h * w2_ref[...], axis=0, keepdims=True) + b2_ref[...]  # (1, s_tile)
    # Softplus(beta=1, threshold=20): log1p(exp(x)) for x <= 20, else x.
    scores = jnp.where(s_raw > 20.0, s_raw,
                       jnp.log1p(jnp.exp(jnp.minimum(s_raw, 20.0))))

    # ---- fused l2-normalization: scale = scores / max(||x||_2, 1e-12) ----
    sumsq = jnp.sum(x * x, axis=0, keepdims=True)           # (1, s_tile)
    scale = scores * jax.lax.rsqrt(jnp.maximum(sumsq, 1e-24))

    if s_valid is not None:                                 # zero spatial padding
        pos = s_idx * s_tile + jax.lax.broadcasted_iota(jnp.int32, scale.shape, 1)
        scale = jnp.where(pos < s_valid, scale, 0.0)

    # ---- attention-weighted pooling as one MXU matvec: acc += scale @ x^T ----
    acc_ref[...] += jax.lax.dot_general(
        scale, x, dimension_numbers=(((1,), (1,)), ((), ())),
        preferred_element_type=jnp.float32)                 # (1, C)

    # ---- logits 1x1 conv, once per batch element ----
    @pl.when(s_idx == pl.num_programs(1) - 1)
    def _finalize():
        out = jax.lax.dot_general(
            acc_ref[...].astype(jnp.bfloat16), wl_ref[...],
            dimension_numbers=(((1,), (0,)), ((), ())),
            preferred_element_type=jnp.float32)             # (1, ncls_p)
        o_ref[0] = out + bl_ref[...]


@functools.partial(jax.jit, static_argnames=("s_tile",))
def delf_atte_head(feat_nchw, w1, b1, w2, b2, wl, bl, *, s_tile=512):
    """DELF attention head on a backbone feature map.

    feat_nchw: (B, C, H, W) float feature map (NCHW).
    w1: (C, 512)   b1: (512,)   -- Attention2d.conv1 (1x1 conv as matmul)
    w2: (512,)     b2: ()       -- Attention2d.conv2
    wl: (C, ncls)  bl: (ncls,)  -- logits conv
    Returns (B, ncls) float32 logits.
    """
    B, C, H, W = feat_nchw.shape
    S = H * W
    ncls = wl.shape[1]

    # Free reshape NCHW -> (B, C, S); no HBM transpose of the big activation.
    x = feat_nchw.reshape(B, C, S).astype(jnp.float32)

    s_tile = max(LANE, (min(s_tile, _round_up(S, LANE)) // LANE) * LANE)
    S_pad = _round_up(S, s_tile)
    if S_pad != S:
        x = jnp.pad(x, ((0, 0), (0, 0), (0, S_pad - S)))
    s_valid = S if S_pad != S else None

    ncls_p = _round_up(ncls, LANE)

    # Weight prep (tiny, one-time): pre-transposed / padded / bf16 matmul operands.
    w1t = jnp.asarray(w1, jnp.float32).T.astype(jnp.bfloat16)          # (512, C)
    b1c = jnp.asarray(b1, jnp.float32).reshape(HIDDEN, 1)
    w2c = jnp.asarray(w2, jnp.float32).reshape(HIDDEN, 1)
    b2m = jnp.asarray(b2, jnp.float32).reshape(1, 1)
    wlp = jnp.pad(jnp.asarray(wl, jnp.float32),
                  ((0, 0), (0, ncls_p - ncls))).astype(jnp.bfloat16)   # (C, ncls_p)
    blp = jnp.pad(jnp.asarray(bl, jnp.float32).reshape(1, ncls),
                  ((0, 0), (0, ncls_p - ncls)))                        # (1, ncls_p)

    kernel = functools.partial(_delf_head_kernel, s_valid=s_valid, s_tile=s_tile)

    grid_spec = pltpu.PrefetchScalarGridSpec(
        num_scalar_prefetch=0,
        grid=(B, S_pad // s_tile),
        in_specs=[
            pl.BlockSpec((1, C, s_tile), lambda b, s: (b, 0, s)),      # feat tile
            # constant-index weight blocks (fetched once, stay resident)
            pl.BlockSpec((HIDDEN, C), lambda b, s: (0, 0)),            # w1t (bf16)
            pl.BlockSpec((HIDDEN, 1), lambda b, s: (0, 0)),            # b1
            pl.BlockSpec((HIDDEN, 1), lambda b, s: (0, 0)),            # w2
            pl.BlockSpec((1, 1), lambda b, s: (0, 0)),                 # b2
            pl.BlockSpec((C, ncls_p), lambda b, s: (0, 0)),            # wl (bf16)
            pl.BlockSpec((1, ncls_p), lambda b, s: (0, 0)),            # bl
        ],
        out_specs=pl.BlockSpec((1, 1, ncls_p), lambda b, s: (b, 0, 0)),
        scratch_shapes=[pltpu.VMEM((1, C), jnp.float32)],
    )

    out = pl.pallas_call(
        kernel,
        out_shape=jax.ShapeDtypeStruct((B, 1, ncls_p), jnp.float32),
        grid_spec=grid_spec,
        compiler_params=pltpu.CompilerParams(
            dimension_semantics=("parallel", "arbitrary"),
            vmem_limit_bytes=48 * 1024 * 1024),
    )(x, w1t, b1c, w2c, b2m, wlp, blp)
    return out[:, 0, :ncls]


def _reference(feat_nchw, w1, b1, w2, b2, wl, bl):
    """Pure-JAX f32 reference replicating the PyTorch head."""
    B, C, H, W = feat_nchw.shape
    x = jnp.transpose(feat_nchw.reshape(B, C, H * W), (0, 2, 1))       # (B,S,C)
    norm = jnp.sqrt(jnp.sum(x * x, axis=-1, keepdims=True))
    atte_x = x / jnp.maximum(norm, 1e-12)
    h = jnp.maximum(x @ w1 + b1[None, None, :], 0.0)
    s_raw = h @ w2[:, None] + b2
    scores = jnp.where(s_raw > 20.0, s_raw,
                       jnp.log1p(jnp.exp(jnp.minimum(s_raw, 20.0))))
    weighted = jnp.sum(atte_x * scores, axis=1)                        # (B,C)
    return weighted @ wl + bl[None, :]


def _init_params(key, C, ncls):
    """Deterministic init mirroring the PyTorch module's scheme."""
    k1, k2, k3, k4, k5, k6 = jax.random.split(key, 6)
    w1 = jax.random.normal(k1, (C, HIDDEN), jnp.float32) * jnp.sqrt(2.0 / HIDDEN)
    b1 = jax.random.uniform(k2, (HIDDEN,), jnp.float32,
                            -1.0 / jnp.sqrt(C), 1.0 / jnp.sqrt(C))
    w2 = jax.random.normal(k3, (HIDDEN,), jnp.float32) * jnp.sqrt(2.0)
    b2 = jax.random.uniform(k4, (), jnp.float32,
                            -1.0 / jnp.sqrt(HIDDEN), 1.0 / jnp.sqrt(HIDDEN))
    wl = jax.random.normal(k5, (C, ncls), jnp.float32) * jnp.sqrt(2.0 / ncls)
    bl = jax.random.uniform(k6, (ncls,), jnp.float32,
                            -1.0 / jnp.sqrt(C), 1.0 / jnp.sqrt(C))
    return w1, b1, w2, b2, wl, bl


if __name__ == "__main__":
    # Small synthetic shapes: B=2, C=64 channels (stand-in for the 1024-ch
    # layer3 output), H=W=16 spatial (S=256 -> two 128-wide S tiles), 16 cls.
    B, C, H, W, NCLS = 2, 64, 16, 16, 16

    key = jax.random.PRNGKey(0)
    kx, kp = jax.random.split(key)
    feat = jax.random.normal(kx, (B, C, H, W), jnp.float32)
    params = _init_params(kp, C, NCLS)

    out = delf_atte_head(feat, *params, s_tile=128)
    out = jax.block_until_ready(out)
    assert out.shape == (B, NCLS), out.shape

    ref = _reference(feat, *params)
    err = float(jnp.max(jnp.abs(out - ref)))
    rel = err / (float(jnp.max(jnp.abs(ref))) + 1e-6)
    # bf16 matmul path -> looser tolerance than the pure-f32 version.
    assert rel < 3e-2, (
        "mismatch vs reference: max abs err %e (rel %e)" % (err, rel))

    print("KERNEL_OK")
</pallas_src>

<mosaic_0001>
module attributes {stable_mosaic.version = 11 : i64} {
  func.func @_delf_head_kernel(%arg0: i32, %arg1: i32, %arg2: memref<1x64x128xf32, #tpu.memory_space<vmem>>, %arg3: memref<512x64xbf16, #tpu.memory_space<vmem>>, %arg4: memref<512x1xf32, #tpu.memory_space<vmem>>, %arg5: memref<512x1xf32, #tpu.memory_space<vmem>>, %arg6: memref<1x1xf32, #tpu.memory_space<vmem>>, %arg7: memref<64x128xbf16, #tpu.memory_space<vmem>>, %arg8: memref<1x128xf32, #tpu.memory_space<vmem>>, %arg9: memref<1x1x128xf32, #tpu.memory_space<vmem>>, %arg10: memref<1x64xf32, #tpu.memory_space<vmem>>) attributes {dimension_semantics = [#tpu.dimension_semantics<parallel>, #tpu.dimension_semantics<arbitrary>], iteration_bounds = array<i64: 2, 2>, scalar_prefetch = 0 : i64, scratch_operands = 1 : i64, tpu.core_type = #tpu.core_type<tc>, window_params = [{transform_indices = @transform_0, window_bounds = array<i64: 1, 64, 128>}, {pipeline_mode = #tpu.pipeline_mode<synchronous>, transform_indices = @transform_1, window_bounds = array<i64: 512, 64>}, {pipeline_mode = #tpu.pipeline_mode<synchronous>, transform_indices = @transform_2, window_bounds = array<i64: 512, 1>}, {pipeline_mode = #tpu.pipeline_mode<synchronous>, transform_indices = @transform_3, window_bounds = array<i64: 512, 1>}, {pipeline_mode = #tpu.pipeline_mode<synchronous>, transform_indices = @transform_4, window_bounds = array<i64: 1, 1>}, {pipeline_mode = #tpu.pipeline_mode<synchronous>, transform_indices = @transform_5, window_bounds = array<i64: 64, 128>}, {pipeline_mode = #tpu.pipeline_mode<synchronous>, transform_indices = @transform_6, window_bounds = array<i64: 1, 128>}, {transform_indices = @transform_7, window_bounds = array<i64: 1, 1, 128>}]} {
    %c0_i32 = arith.constant 0 : i32
    %0 = arith.cmpi eq, %arg1, %c0_i32 : i32
    %1 = arith.extui %0 : i1 to i32
    %c0_i32_0 = arith.constant 0 : i32
    %2 = arith.cmpi ne, %1, %c0_i32_0 : i32
    scf.if %2 {
      %cst_23 = arith.constant 0.000000e+00 : f32
      %42 = vector.broadcast %cst_23 : f32 to vector<1x64xf32>
      %c0_24 = arith.constant 0 : index
      %c0_25 = arith.constant 0 : index
      %43 = vector.load %arg10[%c0_24, %c0_25] : memref<1x64xf32, #tpu.memory_space<vmem>>, vector<1x64xf32>
      tpu.vector_store %arg10[%c0_24, %c0_25], %42 {strides = array<i32>} : memref<1x64xf32, #tpu.memory_space<vmem>>, vector<1x64xf32>,
    } else {
    }
    %c0 = arith.constant 0 : index
    %c0_1 = arith.constant 0 : index
    %c0_2 = arith.constant 0 : index
    %3 = vector.load %arg2[%c0, %c0_1, %c0_2] : memref<1x64x128xf32, #tpu.memory_space<vmem>>, vector<1x64x128xf32>
    %4 = vector.shape_cast %3 : vector<1x64x128xf32> to vector<64x128xf32>
    %c0_3 = arith.constant 0 : index
    %c0_4 = arith.constant 0 : index
    %5 = vector.load %arg3[%c0_3, %c0_4] : memref<512x64xbf16, #tpu.memory_space<vmem>>, vector<512x64xbf16>
    %6 = arith.truncf %4 : vector<64x128xf32> to vector<64x128xbf16>
    %cst = arith.constant dense<0.000000e+00> : vector<512x128xf32>
    %7 = tpu.matmul %5, %6, %cst {dimension_numbers = #tpu.dot_dimension_numbers<[1], [0], [0], [1], [0, 0, 1, 1], [], []>} : vector<512x64xbf16>, vector<64x128xbf16>, vector<512x128xf32> -> vector<512x128xf32>
    %c0_5 = arith.constant 0 : index
    %c0_6 = arith.constant 0 : index
    %8 = vector.load %arg4[%c0_5, %c0_6] : memref<512x1xf32, #tpu.memory_space<vmem>>, vector<512x1xf32>
    %9 = vector.broadcast %8 : vector<512x1xf32> to vector<512x128xf32>
    %10 = arith.addf %7, %9 : vector<512x128xf32>
    %cst_7 = arith.constant 0.000000e+00 : f32
    %11 = vector.broadcast %cst_7 : f32 to vector<512x128xf32>
    %12 = arith.maximumf %10, %11 : vector<512x128xf32>
    %c0_8 = arith.constant 0 : index
    %c0_9 = arith.constant 0 : index
    %13 = vector.load %arg5[%c0_8, %c0_9] : memref<512x1xf32, #tpu.memory_space<vmem>>, vector<512x1xf32>
    %14 = vector.broadcast %13 : vector<512x1xf32> to vector<512x128xf32>
    %15 = arith.mulf %12, %14 : vector<512x128xf32>
    %cst_10 = arith.constant dense<0.000000e+00> : vector<128xf32>
    %16 = vector.multi_reduction <add>, %15, %cst_10 [0] : vector<512x128xf32> to vector<128xf32>
    %17 = vector.shape_cast %16 : vector<128xf32> to vector<1x128xf32>
    %c0_11 = arith.constant 0 : index
    %c0_12 = arith.constant 0 : index
    %18 = vector.load %arg6[%c0_11, %c0_12] : memref<1x1xf32, #tpu.memory_space<vmem>>, vector<1x1xf32>
    %19 = vector.broadcast %18 : vector<1x1xf32> to vector<1x128xf32>
    %20 = arith.addf %17, %19 : vector<1x128xf32>
    %cst_13 = arith.constant 2.000000e+01 : f32
    %21 = vector.broadcast %cst_13 : f32 to vector<1x128xf32>
    %22 = arith.cmpf ogt, %20, %21 : vector<1x128xf32>
    %cst_14 = arith.constant 2.000000e+01 : f32
    %23 = vector.broadcast %cst_14 : f32 to vector<1x128xf32>
    %24 = arith.minimumf %20, %23 : vector<1x128xf32>
    %25 = math.exp %24 : vector<1x128xf32>
    %26 = math.log1p %25 : vector<1x128xf32>
    %27 = arith.select %22, %20, %26 : vector<1x128xi1>, vector<1x128xf32>
    %28 = arith.mulf %4, %4 : vector<64x128xf32>
    %cst_15 = arith.constant dense<0.000000e+00> : vector<128xf32>
    %29 = vector.multi_reduction <add>, %28, %cst_15 [0] : vector<64x128xf32> to vector<128xf32>
    %30 = vector.shape_cast %29 : vector<128xf32> to vector<1x128xf32>
    %cst_16 = arith.constant 1.000000e-24 : f32
    %31 = vector.broadcast %cst_16 : f32 to vector<1x128xf32>
    %32 = arith.maximumf %30, %31 : vector<1x128xf32>
    %33 = math.rsqrt %32 : vector<1x128xf32>
    %34 = arith.mulf %27, %33 : vector<1x128xf32>
    %c0_17 = arith.constant 0 : index
    %c0_18 = arith.constant 0 : index
    %35 = vector.load %arg10[%c0_17, %c0_18] : memref<1x64xf32, #tpu.memory_space<vmem>>, vector<1x64xf32>
    %cst_19 = arith.constant dense<0.000000e+00> : vector<1x64xf32>
    %36 = tpu.matmul %34, %4, %cst_19 {dimension_numbers = #tpu.dot_dimension_numbers<[1], [1], [0], [0], [0, 0, 1, 0], [], []>} : vector<1x128xf32>, vector<64x128xf32>, vector<1x64xf32> -> vector<1x64xf32>
    %37 = arith.addf %35, %36 : vector<1x64xf32>
    %c0_20 = arith.constant 0 : index
    %c0_21 = arith.constant 0 : index
    %38 = vector.load %arg10[%c0_20, %c0_21] : memref<1x64xf32, #tpu.memory_space<vmem>>, vector<1x64xf32>
    tpu.vector_store %arg10[%c0_20, %c0_21], %37 {strides = array<i32>} : memref<1x64xf32, #tpu.memory_space<vmem>>, vector<1x64xf32>,
    %c1_i32 = arith.constant 1 : i32
    %39 = arith.cmpi eq, %arg1, %c1_i32 : i32
    %40 = arith.extui %39 : i1 to i32
    %c0_i32_22 = arith.constant 0 : i32
    %41 = arith.cmpi ne, %40, %c0_i32_22 : i32
    scf.if %41 {
      %c0_23 = arith.constant 0 : index
      %c0_24 = arith.constant 0 : index
      %42 = vector.load %arg10[%c0_23, %c0_24] : memref<1x64xf32, #tpu.memory_space<vmem>>, vector<1x64xf32>
      %43 = arith.truncf %42 : vector<1x64xf32> to vector<1x64xbf16>
      %c0_25 = arith.constant 0 : index
      %c0_26 = arith.constant 0 : index
      %44 = vector.load %arg7[%c0_25, %c0_26] : memref<64x128xbf16, #tpu.memory_space<vmem>>, vector<64x128xbf16>
      %cst_27 = arith.constant dense<0.000000e+00> : vector<1x128xf32>
      %45 = tpu.matmul %43, %44, %cst_27 {dimension_numbers = #tpu.dot_dimension_numbers<[1], [0], [0], [1], [0, 0, 1, 1], [], []>} : vector<1x64xbf16>, vector<64x128xbf16>, vector<1x128xf32> -> vector<1x128xf32>
      %c0_28 = arith.constant 0 : index
      %c0_29 = arith.constant 0 : index
      %46 = vector.load %arg8[%c0_28, %c0_29] : memref<1x128xf32, #tpu.memory_space<vmem>>, vector<1x128xf32>
      %47 = arith.addf %45, %46 : vector<1x128xf32>
      %c0_30 = arith.constant 0 : index
      %c0_31 = arith.constant 0 : index
      %c0_32 = arith.constant 0 : index
      %48 = vector.load %arg9[%c0_30, %c0_31, %c0_32] : memref<1x1x128xf32, #tpu.memory_space<vmem>>, vector<1x1x128xf32>
      %49 = vector.shape_cast %48 : vector<1x1x128xf32> to vector<1x128xf32>
      %50 = vector.shape_cast %47 : vector<1x128xf32> to vector<1x1x128xf32>
      tpu.vector_store %arg9[%c0_30, %c0_31, %c0_32], %50 {strides = array<i32>} : memref<1x1x128xf32, #tpu.memory_space<vmem>>, vector<1x1x128xf32>,
    } else {
    }
    return
  }
  func.func @transform_0(%arg0: i32, %arg1: i32) -> (i32, i32, i32) {
    %c0_i32 = arith.constant 0 : i32
    %c0_i32_0 = arith.constant 0 : i32
    return %arg0, %c0_i32, %arg1 : i32, i32, i32
  }
  func.func @transform_1(%arg0: i32, %arg1: i32) -> (i32, i32) {
    %c0_i32 = arith.constant 0 : i32
    %c0_i32_0 = arith.constant 0 : i32
    %c0_i32_1 = arith.constant 0 : i32
    return %c0_i32, %c0_i32_0 : i32, i32
  }
  func.func @transform_2(%arg0: i32, %arg1: i32) -> (i32, i32) {
    %c0_i32 = arith.constant 0 : i32
    %c0_i32_0 = arith.constant 0 : i32
    %c0_i32_1 = arith.constant 0 : i32
    return %c0_i32, %c0_i32_0 : i32, i32
  }
  func.func @transform_3(%arg0: i32, %arg1: i32) -> (i32, i32) {
    %c0_i32 = arith.constant 0 : i32
    %c0_i32_0 = arith.constant 0 : i32
    %c0_i32_1 = arith.constant 0 : i32
    return %c0_i32, %c0_i32_0 : i32, i32
  }
  func.func @transform_4(%arg0: i32, %arg1: i32) -> (i32, i32) {
    %c0_i32 = arith.constant 0 : i32
    %c0_i32_0 = arith.constant 0 : i32
    %c0_i32_1 = arith.constant 0 : i32
    return %c0_i32, %c0_i32_0 : i32, i32
  }
  func.func @transform_5(%arg0: i32, %arg1: i32) -> (i32, i32) {
    %c0_i32 = arith.constant 0 : i32
    %c0_i32_0 = arith.constant 0 : i32
    %c0_i32_1 = arith.constant 0 : i32
    return %c0_i32, %c0_i32_0 : i32, i32
  }
  func.func @transform_6(%arg0: i32, %arg1: i32) -> (i32, i32) {
    %c0_i32 = arith.constant 0 : i32
    %c0_i32_0 = arith.constant 0 : i32
    %c0_i32_1 = arith.constant 0 : i32
    return %c0_i32, %c0_i32_0 : i32, i32
  }
  func.func @transform_7(%arg0: i32, %arg1: i32) -> (i32, i32, i32) {
    %c0_i32 = arith.constant 0 : i32
    %c0_i32_0 = arith.constant 0 : i32
    %c0_i32_1 = arith.constant 0 : i32
    return %arg0, %c0_i32, %c0_i32_0 : i32, i32, i32
  }
}

</mosaic_0001>

<bundles_post_ra>
// kernel: delf_atte_head.1
= control target key start
LH: loop header
LB: loop body
LE: loop exit
PB: predicated region body
PF: predicated region fallthrough
CT: control target
= control target key end

     0   :  { %s3877_s0 = inlined_call_operand.vmem [shape: f32[2,64,256], index: 0, kind: input, shape index: {}]   ;;  %s3878_s1 = inlined_call_operand.vmem [shape: bf16[512,64], index: 1, kind: input, shape index: {}]   ;;  %s3879_s2 = inlined_call_operand.vmem [shape: f32[512,1], index: 2, kind: input, shape index: {}]   ;;  %s3880_s3 = inlined_call_operand.vmem [shape: f32[512,1], index: 3, kind: input, shape index: {}]   ;;  %s3881_s4 = inlined_call_operand.<no memory space> [shape: f32[1,1], index: 4, kind: input, shape index: {}]   ;;  %s3882_s5 = inlined_call_operand.vmem [shape: bf16[64,128], index: 5, kind: input, shape index: {}]   ;;  %s3883_s6 = inlined_call_operand.vmem [shape: f32[1,128], index: 6, kind: input, shape index: {}]   ;;  %s3884_s7 = inlined_call_operand.hbm [shape: f32[2,1,128], index: 7, kind: output, shape index: {}]  }
   0x1   :  { %3891 = sst [smem:[#allocation26_spill]] %s3877_s0  ;;  %v12_v0 = vstv %s3881_s4 }
   0x2   :  { %13 = vst [vmem:[#allocation3] sm:$0x1] %v12_v0 }
   0x3   :  { %14 = vsyncpa [#allocation6], 0 }
   0x4   :  { %16 = vsyncpa [#allocation6 + $0x1], 0  ;;  %s2800_s26 = smov 0   ;;  %s2802_s27 = smov 0  }
   0x5   :  { %s2804_s28 = smov 0   ;;  %s2806_s29 = smov 0  }
   0x6   :  { %s2808_s30 = smov 0   ;;  %s2810_s8 = smov 0  }
   0x7   :  { %s2812_s9 = smov 0   ;;  %s2814_s10 = smov 0  }
   0x8   :  { %s2816_s4 = smov 0   ;;  %s2818_s11 = smov 0  }
   0x9 LB: > { %3892 = sst [smem:[#allocation8_spill]] %s2743_s4  ;;  %s2243_s12 = sadd.s32 4294967295, %s2747_s11   ;;  %s2747_s11 = sphi %s2818_s11, %s22_s11   ;;  %s2743_s4 = sphi %s2816_s4, %s3938_s4   ;;  %s2739_s10 = sphi %s2814_s10, %s3945_s10   ;;  %s2735_s9 = sphi %s2812_s9, %s3936_s9   ;;  %s2731_s8 = sphi %s2810_s8, %s3944_s8   ;;  %s2727_s30 = sphi %s2808_s30, %s3943_s30   ;;  %s2723_s29 = sphi %s2806_s29, %s3942_s29   ;;  %s2719_s28 = sphi %s2804_s28, %s3941_s28   ;;  %s2715_s27 = sphi %s2802_s27, %s3940_s27   ;;  %s2711_s26 = sphi %s2800_s26, %s3939_s26  }
   0xa   : > { %s2244_s13 = sadd.s32 4294967294, %s2747_s11   ;;  %s31_s14 = sadd.s32 1, %s2739_s10 }
   0xb   : > { %s34_s15 = sadd.s32 1, %s2743_s4  ;;  %p32_p0 = scmp.ge.s32.totalorder %s31_s14, 2 }
   0xc   : > { %s43_s16 = sadd.s32 1, %s2727_s30  ;;  %p50_p1 = scmp.ne.s32.totalorder %s2727_s30, %s2723_s29 }
   0xd   : > { %p51_p2 = scmp.eq.s32.totalorder %s2747_s11, 0  ;;  %s3947_s14 = smov (%p32_p0, %s31_s14), 0 }
   0xe   : > { %3893 = sst [smem:[#allocation9_spill]] %s3947_s14  ;;  %s3949_s15 = smov (!%p32_p0, %s34_s15), %s2743_s4 }
   0xf   : > { %s39_s17 = ssub.s32 %s2739_s10, %s3947_s14  ;;  %p2863_p3 = por %p51_p2, %p50_p1 }
  0x10   : > { %p36_p4 = scmp.ge.s32.totalorder %s3949_s15, 2  ;;  %s195_s19 = sadd.s32 1, %s2719_s28 }
  0x11   : > { %p205_p5 = scmp.ne.s32.totalorder %s2719_s28, %s2715_s27  ;;  %p206_p6 = scmp.eq.s32.totalorder %s2243_s12, 3 }
  0x12   : > { %s3951_s15 = smov (%p36_p4, %s3949_s15), 0  ;;  %p211_p8 = scmp.ne.s32.totalorder %s2715_s27, %s2711_s26 }
  0x13   : > { %3895 = sst [smem:[#allocation10_spill]] %s3951_s15  ;;  %p2872_p7 = por %p206_p6, %p205_p5 }
  0x14   : > { %s38_s21 = ssub.s32 %s2743_s4, %s3951_s15  ;;  %p212_p9 = scmp.eq.s32.totalorder %s2244_s13, 3 }
  0x15   : > { %s40_s22 = sor.u32 %s39_s17, %s38_s21  ;;  %p193_p10 = scmp.eq.s32.totalorder %s38_s21, 0 }
  0x16   : > { %p41_p11 = scmp.eq.s32.totalorder %s40_s22, 0  ;;  %p2880_p12 = por %p212_p9, %p211_p8 }
  0x17   : > { %s2885_s24 = scalar_select %p193_p10, %s2719_s28, %s195_s19  }
  0x18   : > { %s2888_s25 = scalar_select %p41_p11, %s2727_s30, %s43_s16  }
  0x19   : > { %p2246_p13 = scmp.ge.s32.totalorder %s2747_s11, 4 }
  0x1b   : > { %246 = sbr.rel (%p2246_p13) target bundleno = 48 (0x30), region = 40 }
  0x22   : > { %249 = sbr.rel (!%p2863_p3) target bundleno = 48 (0x30), region = 44  ;;  %s251_s12 = sand.u32 (%p2863_p3), 1, %s2727_s30  }
  0x23   : > { %s2248_s13 = sshll.u32 (%p2863_p3), %s2743_s4, 4  ;;  %s2247_s17 = sshll.u32 (%p2863_p3), %s251_s12, 6 }
  0x24   : > { %s255_s21 = sadd.s32 (%p2863_p3), %s2739_s10, %s2248_s13  ;;  %s3898_s0 = sld [smem:[#allocation26_spill]] (%p2863_p3) }
  0x25   : > { %s2249_s22 = sshll.u32 (%p2863_p3), %s255_s21, 3  ;;  %s253_s16 = scalar_lea.vmem (%p2863_p3), [#allocation4], %s2247_s17 }
  0x2a   : > { %s257_s19 = scalar_lea.vmem %s3898_s0, %s2249_s22 }
  0x2b   : > { %v299_v1 = vld [vmem:[%s257_s19] sm:$0xff]  ;;  %v301_v2 = vld [vmem:[%s257_s19 + $0x10] sm:$0xff] }
  0x2c   : > { %v303_v3 = vld [vmem:[%s257_s19 + $0x20] sm:$0xff]  ;;  %300 = vst [vmem:[%s253_s16] sm:$0xff] %v299_v1  ;;  %302 = vst [vmem:[%s253_s16 + $0x8] sm:$0xff] %v301_v2  ;;  %v305_v4 = vld [vmem:[%s257_s19 + $0x30] sm:$0xff] }
  0x2d   : > { %304 = vst [vmem:[%s253_s16 + $0x10] sm:$0xff] %v303_v3  ;;  %v307_v5 = vld [vmem:[%s257_s19 + $0x40] sm:$0xff]  ;;  %v309_v6 = vld [vmem:[%s257_s19 + $0x50] sm:$0xff]  ;;  %306 = vst [vmem:[%s253_s16 + $0x18] sm:$0xff] %v305_v4 }
  0x2e   : > { %308 = vst [vmem:[%s253_s16 + $0x20] sm:$0xff] %v307_v5  ;;  %310 = vst [vmem:[%s253_s16 + $0x28] sm:$0xff] %v309_v6  ;;  %v311_v7 = vld [vmem:[%s257_s19 + $0x60] sm:$0xff]  ;;  %v313_v8 = vld [vmem:[%s257_s19 + $0x70] sm:$0xff] }
  0x2f   : > { %312 = vst [vmem:[%s253_s16 + $0x30] sm:$0xff] %v311_v7  ;;  %314 = vst [vmem:[%s253_s16 + $0x38] sm:$0xff] %v313_v8 }
  0x30 PF: > { %p2250_p0 = scmp.ge.s32.totalorder %s2747_s11, 1  ;;  %p319_p1 = scmp.lt.s32.totalorder %s2747_s11, 5 }
  0x32   : > { %p320_p2 = pnand %p2250_p0, %p319_p1 }
  0x34   : > { %323 = sbr.rel (%p320_p2) target bundleno = 971 (0x3cb), region = 82 }
  0x3b   : > { %s326_s14 = sand.u32 1, %s2723_s29   ;;  %s3887_s15 = sand.u32 1, %s2715_s27  }
  0x3c   : > { %s2251_s18 = sshll.u32 %s326_s14, 6  ;;  %s2907_s13 = scalar_lea.vmem [#allocation5], %s3887_s15 }
  0x3d   : > { %s2903_s12 = scalar_lea.vmem [#allocation4], %s2251_s18  ;;  %p2252_p3 = scmp.ne.s32.totalorder %s2731_s8, 0 }
  0x3e   : > { %vm361_vm0 = vcmask (!%p2252_p3), 516096   ;;  %v2749_v9 = vmov (!%p2252_p3), 0.0  }
  0x3f   : > { %360 = sbr.rel (%p2252_p3) target bundleno = 70 (0x46), region = 90  ;;  %362 = vst.msk [vmem:[#allocation2] sm:$0x1] (!%p2252_p3), %vm361_vm0, %v2749_v9 }
  0x46 PF: > { %v441_v10 = vld [vmem:[%s3879_s2 + $0x10] sm:$0xff]  ;;  %v439_v11 = vld [vmem:[%s3879_s2] sm:$0xff]  ;;  %v2750_v13 = vmov 0   ;;  %v442_v20 = vld [vmem:[%s3879_s2 + $0x18] sm:$0xff]  ;;  %vm983_vm1 = vcmask 523264   ;;  %vm2752_vm2 = vmmov 0  }
  0x47   : > { %v363_v12 = vld [vmem:[%s2903_s12] sm:$0xff]  ;;  %2594 = vset.pattern.permute.xlu1 %v2750_v13  ;;  %2593 = vset.pattern.permute.xlu0 %v2750_v13  ;;  %v364_v14 = vld [vmem:[%s2903_s12 + $0x8] sm:$0xff]  ;;  %v365_v18 = vld [vmem:[%s2903_s12 + $0x10] sm:$0xff]  ;;  %vm2071_vm5 = vcmask 516096   ;;  %p2317_p4 = scmp.ne.s32.totalorder %s2731_s8, 1 }
  0x48   : > { %v1975_v15 = vmul.f32 %v363_v12, %v363_v12  ;;  %515 = vperm.xlu1 %2594, %v441_v10   ;;  %505 = vperm.xlu0 %2593, %v439_v11   ;;  %v2918_v16 = vpack.c.bf16 %v364_v14, %v363_v12  ;;  %v1976_v17 = vmul.f32 %v364_v14, %v364_v14  ;;  %v366_v19 = vld [vmem:[%s2903_s12 + $0x18] sm:$0xff]  ;;  %v440_v21 = vld [vmem:[%s3879_s2 + $0x8] sm:$0xff]  ;;  %v369_v36 = vld [vmem:[%s2903_s12 + $0x30] sm:$0xff]  ;;  %vm2755_vm6 = vmmov (!%p2317_p4), 0  }
  0x49   : > { %v2928_v22 = vpack.c.bf16 %v366_v19, %v365_v18  ;;  %v1977_v23 = vmul.f32 %v365_v18, %v365_v18  ;;  %v1978_v25 = vmul.f32 %v366_v19, %v366_v19  ;;  %v367_v26 = vld [vmem:[%s2903_s12 + $0x20] sm:$0xff]  ;;  %v368_v27 = vld [vmem:[%s2903_s12 + $0x28] sm:$0xff]  ;;  %v370_v37 = vld [vmem:[%s2903_s12 + $0x38] sm:$0xff]  ;;  %v1981_v39 = vmul.f32 %v369_v36, %v369_v36 }
  0x4a   : > { %2376 = vmatprep.subr.bf16.mxu0 %v2918_v16  ;;  %v1983_v24 = vadd.f32 %v1976_v17, %v1975_v15  ;;  %v444_v28 = vld [vmem:[%s3879_s2 + $0x28] sm:$0xff]  ;;  %2491 = vmatprep.subr.bf16.mxu1 %v2918_v16  ;;  %v1979_v30 = vmul.f32 %v367_v26, %v367_v26  ;;  %v2595_v31 = vld [vmem:[%s3878_s1] sm:$0xff]   ;;  %v2945_v33 = vpack.c.bf16 %v368_v27, %v367_v26  ;;  %v446_v40 = vld [vmem:[%s3879_s2 + $0x38] sm:$0xff] }
  0x4b   : > { %2377 = vmatpush3.bf16.msra.mxu0 %v2918_v16  ;;  %v443_v32 = vld [vmem:[%s3879_s2 + $0x20] sm:$0xff]  ;;  %2495 = vmatpush3.bf16.msra.mxu1 %v2918_v16  ;;  %v1980_v35 = vmul.f32 %v368_v27, %v368_v27  ;;  %v445_v41 = vld [vmem:[%s3879_s2 + $0x30] sm:$0xff]  ;;  %v2960_v42 = vpack.c.bf16 %v370_v37, %v369_v36  ;;  %v1982_v44 = vmul.f32 %v370_v37, %v370_v37  ;;  %v448_v46 = vld [vmem:[%s3879_s2 + $0x48] sm:$0xff] }
  0x4c   : > { %520 = vperm.xlu1 %2594, %v442_v20   ;;  %510 = vperm.xlu0 %2593, %v440_v21   ;;  %v1984_v29 = vadd.f32 %v1983_v24, %v1977_v23  ;;  %v447_v47 = vld [vmem:[%s3879_s2 + $0x40] sm:$0xff]  ;;  %v2596_v49 = vld [vmem:[%s3878_s1 + $0x8] sm:$0xff]   ;;  %v2597_v50 = vld [vmem:[%s3878_s1 + $0x10] sm:$0xff]  }
  0x4d   : > { %2378 = vmatprep.subr.bf16.mxu0 %v2928_v22  ;;  %2384 = vmatprep.mubr.msk.bf16.mxu0 %vm983_vm1, %v2595_v31  ;;  %3899 = vst [vmem:[#allocation11_spill] sm:$0xff] %v2960_v42  ;;  %v450_v51 = vld [vmem:[%s3879_s2 + $0x58] sm:$0xff]  ;;  %v449_v52 = vld [vmem:[%s3879_s2 + $0x50] sm:$0xff]  ;;  %v452_v53 = vld [vmem:[%s3879_s2 + $0x68] sm:$0xff] }
  0x4e   : > { %v1985_v34 = vadd.f32 %v1984_v29, %v1978_v25  ;;  %2492 = vmatprep.subr.bf16.mxu1 %v2928_v22  ;;  %v451_v54 = vld [vmem:[%s3879_s2 + $0x60] sm:$0xff]  ;;  %v2605_v55 = vld [vmem:[%s3878_s1 + $0x90] sm:$0xff]   ;;  %v2606_v56 = vld [vmem:[%s3878_s1 + $0x98] sm:$0xff]  }
  0x4f   : > { %2379 = vmatpush3.bf16.msra.mxu0 %v2928_v22  ;;  %2496 = vmatpush3.bf16.msra.mxu1 %v2928_v22  ;;  %v2598_v57 = vld [vmem:[%s3878_s1 + $0x18] sm:$0xff]   ;;  %v2599_v58 = vld [vmem:[%s3878_s1 + $0x20] sm:$0xff]   ;;  %v453_v60 = vld [vmem:[%s3879_s2 + $0x70] sm:$0xff] }
  0x50   : > { %530 = vperm.xlu1 %2594, %v444_v28   ;;  %525 = vperm.xlu0 %2593, %v443_v32   ;;  %v1986_v38 = vadd.f32 %v1985_v34, %v1979_v30  ;;  %v454_v59 = vld [vmem:[%s3879_s2 + $0x78] sm:$0xff]  ;;  %v1434_v61 = vld [vmem:[%s3880_s3 + $0x8] sm:$0xff]  ;;  %v1433_v62 = vld [vmem:[%s3880_s3] sm:$0xff] }
  0x51   : > { %2380 = vmatprep.subr.bf16.mxu0 %v2945_v33  ;;  %2493 = vmatprep.subr.bf16.mxu1 %v2945_v33  ;;  %v2611_v63 = vld [vmem:[%s3878_s1 + $0xa0] sm:$0xff]   ;;  %v2600_v0 = vld [vmem:[%s3878_s1 + $0x28] sm:$0xff]   ;;  %v2601_v2 = vld [vmem:[%s3878_s1 + $0x30] sm:$0xff]  }
  0x52   : > { %v1987_v43 = vadd.f32 %v1986_v38, %v1980_v35  ;;  %2420 = vmatprep.mubr.msk.bf16.mxu1 %vm983_vm1, %v2605_v55  ;;  %v2612_v1 = vld [vmem:[%s3878_s1 + $0xa8] sm:$0xff]   ;;  %v1436_v3 = vld [vmem:[%s3880_s3 + $0x18] sm:$0xff]  ;;  %v1435_v4 = vld [vmem:[%s3880_s3 + $0x10] sm:$0xff] }
  0x53   : > { %2381 = vmatpush3.bf16.msra.mxu0 %v2945_v33  ;;  %2497 = vmatpush3.bf16.msra.mxu1 %v2945_v33  ;;  %v1438_v5 = vld [vmem:[%s3880_s3 + $0x28] sm:$0xff]  ;;  %v1437_v6 = vld [vmem:[%s3880_s3 + $0x20] sm:$0xff]  ;;  %v2602_v7 = vld [vmem:[%s3878_s1 + $0x38] sm:$0xff]  }
  0x54   : > { %540 = vperm.xlu1 %2594, %v446_v40   ;;  %535 = vperm.xlu0 %2593, %v445_v41   ;;  %v1988_v45 = vadd.f32 %v1987_v43, %v1981_v39  ;;  %v2617_v8 = vld [vmem:[%s3878_s1 + $0xb0] sm:$0xff]   ;;  %v2603_v9 = vld [vmem:[%s3878_s1 + $0x40] sm:$0xff]   ;;  %v2618_v10 = vld [vmem:[%s3878_s1 + $0xb8] sm:$0xff]  }
  0x55   : > { %2382 = vmatprep.subr.bf16.mxu0 %v2960_v42  ;;  %2494 = vmatprep.subr.bf16.mxu1 %v2960_v42  ;;  %v1440_v11 = vld [vmem:[%s3880_s3 + $0x38] sm:$0xff]  ;;  %v1439_v12 = vld [vmem:[%s3880_s3 + $0x30] sm:$0xff]  ;;  %v2619_v13 = vld [vmem:[%s3878_s1 + $0xc0] sm:$0xff]  }
  0x56   : > { %v2973_v48 = vadd.f32 %v1988_v45, %v1982_v44  ;;  %v1442_v14 = vld [vmem:[%s3880_s3 + $0x48] sm:$0xff]  ;;  %v1441_v15 = vld [vmem:[%s3880_s3 + $0x40] sm:$0xff]  ;;  %v2607_v18 = vld [vmem:[%s3878_s1 + $0x50] sm:$0xff]  }
  0x57   : > { %2383 = vmatpush3.bf16.msra.mxu0 %v2960_v42  ;;  %2498 = vmatpush3.bf16.msra.mxu1 %v2960_v42  ;;  %v2604_v17 = vld [vmem:[%s3878_s1 + $0x48] sm:$0xff]   ;;  %v2621_v20 = vld [vmem:[%s3878_s1 + $0xd0] sm:$0xff]   ;;  %v1444_v21 = vld [vmem:[%s3880_s3 + $0x58] sm:$0xff] }
  0x58   : > { %3900 = vst [vmem:[#allocation12_spill] sm:$0xff] %v2973_v48  ;;  %550 = vperm.xlu1 %2594, %v448_v46   ;;  %545 = vperm.xlu0 %2593, %v447_v47   ;;  %v2620_v19 = vld [vmem:[%s3878_s1 + $0xc8] sm:$0xff]   ;;  %v1443_v23 = vld [vmem:[%s3880_s3 + $0x50] sm:$0xff]  ;;  %v1445_v25 = vld [vmem:[%s3880_s3 + $0x60] sm:$0xff] }
  0x59   : > { %v1446_v24 = vld [vmem:[%s3880_s3 + $0x68] sm:$0xff]  ;;  %v2608_v26 = vld [vmem:[%s3878_s1 + $0x58] sm:$0xff]   ;;  %v2609_v28 = vld [vmem:[%s3878_s1 + $0x60] sm:$0xff]  }
  0x5a   : > { %2385 = vmatmul.mubr.msk.bf16.vlgmr.msra.gmra.mrb[0].mxu0 %vm983_vm1, %v2596_v49  ;;  %2421 = vmatmul.mubr.msk.bf16.vlgmr.msra.gmra.mrb[0].mxu1 %vm983_vm1, %v2606_v56  ;;  %v2622_v27 = vld [vmem:[%s3878_s1 + $0xd8] sm:$0xff]   ;;  %v2623_v29 = vld [vmem:[%s3878_s1 + $0xe0] sm:$0xff]   ;;  %v1447_v30 = vld [vmem:[%s3880_s3 + $0x70] sm:$0xff] }
  0x5b   : > { %2388 = vmatprep.mubr.msk.bf16.mxu0 %vm983_vm1, %v2597_v50  ;;  %2424 = vmatprep.mubr.msk.bf16.mxu1 %vm983_vm1, %v2611_v63  ;;  %v455_v31 = vld [vmem:[%s3879_s2 + $0x80] sm:$0xff]  ;;  %v1448_v32 = vld [vmem:[%s3880_s3 + $0x78] sm:$0xff]  ;;  %v456_v34 = vld [vmem:[%s3879_s2 + $0x88] sm:$0xff] }
  0x5c   : > { %560 = vperm.xlu1 %2594, %v450_v51   ;;  %555 = vperm.xlu0 %2593, %v449_v52   ;;  %v2610_v35 = vld [vmem:[%s3878_s1 + $0x68] sm:$0xff]   ;;  %v2613_v37 = vld [vmem:[%s3878_s1 + $0x70] sm:$0xff]   ;;  %v1449_v39 = vld [vmem:[%s3880_s3 + $0x80] sm:$0xff] }
  0x5d   : > { %v2624_v36 = vld [vmem:[%s3878_s1 + $0xe8] sm:$0xff]   ;;  %v2625_v38 = vld [vmem:[%s3878_s1 + $0xf0] sm:$0xff]   ;;  %v458_v43 = vld [vmem:[%s3879_s2 + $0x98] sm:$0xff] }
  0x5e   : > { %v457_v40 = vld [vmem:[%s3879_s2 + $0x90] sm:$0xff]  ;;  %v1450_v41 = vld [vmem:[%s3880_s3 + $0x88] sm:$0xff]  ;;  %v2614_v44 = vld [vmem:[%s3878_s1 + $0x78] sm:$0xff]  }
  0x5f   : > { %v2626_v45 = vld [vmem:[%s3878_s1 + $0xf8] sm:$0xff]   ;;  %v2615_v46 = vld [vmem:[%s3878_s1 + $0x80] sm:$0xff]   ;;  %v1451_v47 = vld [vmem:[%s3880_s3 + $0x90] sm:$0xff] }
  0x60   : > { %570 = vperm.xlu1 %2594, %v452_v53   ;;  %565 = vperm.xlu0 %2593, %v451_v54   ;;  %v459_v49 = vld [vmem:[%s3879_s2 + $0xa0] sm:$0xff]  ;;  %v1452_v50 = vld [vmem:[%s3880_s3 + $0x98] sm:$0xff]  ;;  %v460_v51 = vld [vmem:[%s3879_s2 + $0xa8] sm:$0xff] }
  0x61   : > { %v2616_v52 = vld [vmem:[%s3878_s1 + $0x88] sm:$0xff]   ;;  %v1453_v53 = vld [vmem:[%s3880_s3 + $0xa0] sm:$0xff]  ;;  %v461_v54 = vld [vmem:[%s3879_s2 + $0xb0] sm:$0xff] }
  0x62   : > { %2389 = vmatmul.mubr.msk.bf16.gmra.mrb[4].mxu0 %vm983_vm1, %v2598_v57  ;;  %2425 = vmatmul.mubr.msk.bf16.gmra.mrb[4].mxu1 %vm983_vm1, %v2612_v1  ;;  %v1454_v55 = vld [vmem:[%s3880_s3 + $0xa8] sm:$0xff]  ;;  %v462_v56 = vld [vmem:[%s3879_s2 + $0xb8] sm:$0xff]  ;;  %v1455_v57 = vld [vmem:[%s3880_s3 + $0xb0] sm:$0xff] }
  0x63   : > { %2392 = vmatprep.mubr.msk.bf16.mxu0 %vm983_vm1, %v2599_v58  ;;  %2428 = vmatprep.mubr.msk.bf16.mxu1 %vm983_vm1, %v2617_v8  ;;  %v463_v58 = vld [vmem:[%s3879_s2 + $0xc0] sm:$0xff]  ;;  %v1458_v63 = vld [vmem:[%s3880_s3 + $0xc8] sm:$0xff]  ;;  %v1459_v1 = vld [vmem:[%s3880_s3 + $0xd0] sm:$0xff] }
  0x64   : > { %580 = vperm.xlu1 %2594, %v454_v59   ;;  %575 = vperm.xlu0 %2593, %v453_v60   ;;  %v1456_v59 = vld [vmem:[%s3880_s3 + $0xb8] sm:$0xff]  ;;  %v464_v60 = vld [vmem:[%s3879_s2 + $0xc8] sm:$0xff] }
  0x65   : > { %v470_v8 = vld [vmem:[%s3879_s2 + $0xf8] sm:$0xff] }
  0x68   : > { %1504 = vperm.xlu1 %2594, %v1434_v61   ;;  %1499 = vperm.xlu0 %2593, %v1433_v62   ;;  %v1457_v61 = vld [vmem:[%s3880_s3 + $0xc0] sm:$0xff]  ;;  %v465_v62 = vld [vmem:[%s3879_s2 + $0xd0] sm:$0xff] }
  0x6a   : > { %2393 = vmatmul.mubr.msk.bf16.gmra.mrb[8].mxu0 %vm983_vm1, %v2600_v0  ;;  %2429 = vmatmul.mubr.msk.bf16.gmra.mrb[8].mxu1 %vm983_vm1, %v2618_v10  ;;  %v466_v0 = vld [vmem:[%s3879_s2 + $0xd8] sm:$0xff]  ;;  %v471_v10 = vld [vmem:[%s3879_s2 + $0x100] sm:$0xff] }
  0x6b   : > { %2396 = vmatprep.mubr.msk.bf16.mxu0 %vm983_vm1, %v2601_v2  ;;  %2432 = vmatprep.mubr.msk.bf16.mxu1 %vm983_vm1, %v2619_v13  ;;  %v467_v2 = vld [vmem:[%s3879_s2 + $0xe0] sm:$0xff] }
  0x6c   : > { %1514 = vperm.xlu1 %2594, %v1436_v3   ;;  %1509 = vperm.xlu0 %2593, %v1435_v4   ;;  %v1460_v3 = vld [vmem:[%s3880_s3 + $0xd8] sm:$0xff]  ;;  %v468_v4 = vld [vmem:[%s3879_s2 + $0xe8] sm:$0xff] }
  0x70   : > { %1524 = vperm.xlu1 %2594, %v1438_v5   ;;  %1519 = vperm.xlu0 %2593, %v1437_v6   ;;  %v1461_v5 = vld [vmem:[%s3880_s3 + $0xe0] sm:$0xff]  ;;  %v469_v6 = vld [vmem:[%s3879_s2 + $0xf0] sm:$0xff] }
  0x72   : > { %2397 = vmatmul.mubr.msk.bf16.gmra.mrb[12].mxu0 %vm983_vm1, %v2602_v7  ;;  %2433 = vmatmul.mubr.msk.bf16.gmra.mrb[12].mxu1 %vm983_vm1, %v2620_v19  ;;  %v1462_v7 = vld [vmem:[%s3880_s3 + $0xe8] sm:$0xff] }
  0x73   : > { %2400 = vmatprep.mubr.msk.bf16.mxu0 %vm983_vm1, %v2603_v9  ;;  %2436 = vmatprep.mubr.msk.bf16.mxu1 %vm983_vm1, %v2621_v20  ;;  %v1463_v9 = vld [vmem:[%s3880_s3 + $0xf0] sm:$0xff]  ;;  %v1466_v20 = vld [vmem:[%s3880_s3 + $0x108] sm:$0xff] }
  0x74   : > { %1534 = vperm.xlu1 %2594, %v1440_v11   ;;  %1529 = vperm.xlu0 %2593, %v1439_v12   ;;  %v1464_v11 = vld [vmem:[%s3880_s3 + $0xf8] sm:$0xff]  ;;  %v472_v12 = vld [vmem:[%s3879_s2 + $0x108] sm:$0xff] }
  0x78   : > { %1544 = vperm.xlu1 %2594, %v1442_v14   ;;  %1539 = vperm.xlu0 %2593, %v1441_v15   ;;  %v1465_v15 = vld [vmem:[%s3880_s3 + $0x100] sm:$0xff] }
  0x7a   : > { %2401 = vmatmul.mubr.msk.bf16.gmra.mrb[16].mxu0 %vm983_vm1, %v2604_v17  ;;  %2437 = vmatmul.mubr.msk.bf16.gmra.mrb[16].mxu1 %vm983_vm1, %v2622_v27  ;;  %v473_v17 = vld [vmem:[%s3879_s2 + $0x110] sm:$0xff] }
  0x7b   : > { %2404 = vmatprep.mubr.msk.bf16.mxu0 %vm983_vm1, %v2607_v18  ;;  %2440 = vmatprep.mubr.msk.bf16.mxu1 %vm983_vm1, %v2623_v29  ;;  %v1468_v29 = vld [vmem:[%s3880_s3 + $0x118] sm:$0xff] }
  0x7c   : > { %1554 = vperm.xlu1 %2594, %v1444_v21   ;;  %1549 = vperm.xlu0 %2593, %v1443_v23   ;;  %v474_v21 = vld [vmem:[%s3879_s2 + $0x118] sm:$0xff] }
  0x80   : > { %1564 = vperm.xlu1 %2594, %v1446_v24   ;;  %1559 = vperm.xlu0 %2593, %v1445_v25   ;;  %v1467_v25 = vld [vmem:[%s3880_s3 + $0x110] sm:$0xff] }
  0x82   : > { %2405 = vmatmul.mubr.msk.bf16.gmra.mrb[20].mxu0 %vm983_vm1, %v2608_v26  ;;  %2441 = vmatmul.mubr.msk.bf16.gmra.mrb[20].mxu1 %vm983_vm1, %v2624_v36  ;;  %v475_v26 = vld [vmem:[%s3879_s2 + $0x120] sm:$0xff] }
  0x83   : > { %2408 = vmatprep.mubr.msk.bf16.mxu0 %vm983_vm1, %v2609_v28  ;;  %2444 = vmatprep.mubr.msk.bf16.mxu1 %vm983_vm1, %v2625_v38  ;;  %v1470_v38 = vld [vmem:[%s3880_s3 + $0x128] sm:$0xff] }
  0x84   : > { %1569 = vperm.xlu1 %2594, %v1447_v30   ;;  %585 = vperm.xlu0 %2593, %v455_v31   ;;  %v476_v30 = vld [vmem:[%s3879_s2 + $0x128] sm:$0xff] }
  0x88   : > { %1574 = vperm.xlu1 %2594, %v1448_v32   ;;  %590 = vperm.xlu0 %2593, %v456_v34   ;;  %v1469_v34 = vld [vmem:[%s3880_s3 + $0x120] sm:$0xff] }
  0x8a   : > { %2409 = vmatmul.mubr.msk.bf16.gmra.mrb[24].mxu0 %vm983_vm1, %v2610_v35  ;;  %2445 = vmatmul.mubr.msk.bf16.gmra.mrb[24].mxu1 %vm983_vm1, %v2626_v45  ;;  %v477_v35 = vld [vmem:[%s3879_s2 + $0x130] sm:$0xff] }
  0x8b   : > { %2412 = vmatprep.mubr.msk.bf16.mxu0 %vm983_vm1, %v2613_v37 }
  0x8c   : > { %1579 = vperm.xlu1 %2594, %v1449_v39   ;;  %595 = vperm.xlu0 %2593, %v457_v40   ;;  %v478_v39 = vld [vmem:[%s3879_s2 + $0x138] sm:$0xff] }
  0x90   : > { %1584 = vperm.xlu1 %2594, %v1450_v41   ;;  %600 = vperm.xlu0 %2593, %v458_v43   ;;  %v1471_v43 = vld [vmem:[%s3880_s3 + $0x130] sm:$0xff] }
  0x92   : > { %2413 = vmatmul.mubr.msk.bf16.gmra.mrb[28].mxu0 %vm983_vm1, %v2614_v44  ;;  %v479_v44 = vld [vmem:[%s3879_s2 + $0x140] sm:$0xff] }
  0x93   : > { %2416 = vmatprep.mubr.msk.bf16.mxu0 %vm983_vm1, %v2615_v46 }
  0x94   : > { %1589 = vperm.xlu1 %2594, %v1451_v47   ;;  %605 = vperm.xlu0 %2593, %v459_v49   ;;  %v1472_v47 = vld [vmem:[%s3880_s3 + $0x138] sm:$0xff]  ;;  %v480_v49 = vld [vmem:[%s3879_s2 + $0x148] sm:$0xff] }
  0x98   : > { %1594 = vperm.xlu1 %2594, %v1452_v50   ;;  %610 = vperm.xlu0 %2593, %v460_v51  }
  0x9a   : > { %2417 = vmatmul.mubr.msk.bf16.gmra.mrb[32].mxu0 %vm983_vm1, %v2616_v52  ;;  %v1473_v52 = vld [vmem:[%s3880_s3 + $0x140] sm:$0xff] }
  0x9c   : > { %1599 = vperm.xlu1 %2594, %v1453_v53   ;;  %615 = vperm.xlu0 %2593, %v461_v54   ;;  %v481_v53 = vld [vmem:[%s3879_s2 + $0x150] sm:$0xff] }
  0xa0   : > { %1604 = vperm.xlu1 %2594, %v1454_v55   ;;  %620 = vperm.xlu0 %2593, %v462_v56   ;;  %v1474_v56 = vld [vmem:[%s3880_s3 + $0x148] sm:$0xff] }
  0xa4   : > { %1609 = vperm.xlu1 %2594, %v1455_v57   ;;  %625 = vperm.xlu0 %2593, %v463_v58   ;;  %v482_v57 = vld [vmem:[%s3879_s2 + $0x158] sm:$0xff] }
  0xa8   : > { %1614 = vperm.xlu1 %2594, %v1456_v59   ;;  %630 = vperm.xlu0 %2593, %v464_v60   ;;  %v1475_v60 = vld [vmem:[%s3880_s3 + $0x150] sm:$0xff] }
  0xac   : > { %1619 = vperm.xlu1 %2594, %v1457_v61   ;;  %635 = vperm.xlu0 %2593, %v465_v62   ;;  %v483_v61 = vld [vmem:[%s3879_s2 + $0x160] sm:$0xff] }
  0xb0   : > { %1624 = vperm.xlu1 %2594, %v1458_v63   ;;  %640 = vperm.xlu0 %2593, %v466_v0   ;;  %v1476_v0 = vld [vmem:[%s3880_s3 + $0x158] sm:$0xff] }
  0xb4   : > { %1629 = vperm.xlu1 %2594, %v1459_v1   ;;  %645 = vperm.xlu0 %2593, %v467_v2   ;;  %v484_v1 = vld [vmem:[%s3879_s2 + $0x168] sm:$0xff] }
  0xb8   : > { %1634 = vperm.xlu1 %2594, %v1460_v3   ;;  %650 = vperm.xlu0 %2593, %v468_v4   ;;  %v1477_v4 = vld [vmem:[%s3880_s3 + $0x160] sm:$0xff] }
  0xbc   : > { %1639 = vperm.xlu1 %2594, %v1461_v5   ;;  %655 = vperm.xlu0 %2593, %v469_v6   ;;  %v485_v5 = vld [vmem:[%s3879_s2 + $0x170] sm:$0xff] }
  0xc0   : > { %1644 = vperm.xlu1 %2594, %v1462_v7   ;;  %660 = vperm.xlu0 %2593, %v470_v8   ;;  %v1478_v8 = vld [vmem:[%s3880_s3 + $0x168] sm:$0xff] }
  0xc4   : > { %1649 = vperm.xlu1 %2594, %v1463_v9   ;;  %665 = vperm.xlu0 %2593, %v471_v10   ;;  %v486_v9 = vld [vmem:[%s3879_s2 + $0x178] sm:$0xff] }
  0xc7   : > { %v3270_v13 = vpop.permute.xlu1 %515  ;;  %v3272_v14 = vpop.permute.xlu0 %505 }
  0xc8   : > { %1654 = vperm.xlu1 %2594, %v1464_v11   ;;  %670 = vperm.xlu0 %2593, %v472_v12   ;;  %v1479_v12 = vld [vmem:[%s3880_s3 + $0x170] sm:$0xff] }
  0xcb   : > { %v3280_v18 = vpop.permute.xlu1 %520  ;;  %v3282_v19 = vpop.permute.xlu0 %510 }
  0xcc   : > { %1659 = vperm.xlu1 %2594, %v1465_v15   ;;  %675 = vperm.xlu0 %2593, %v473_v17   ;;  %v487_v15 = vld [vmem:[%s3879_s2 + $0x180] sm:$0xff] }
  0xcf   : > { %v3290_v23 = vpop.permute.xlu1 %530  ;;  %v3292_v24 = vpop.permute.xlu0 %525 }
  0xd0   : > { %1664 = vperm.xlu1 %2594, %v1466_v20   ;;  %680 = vperm.xlu0 %2593, %v474_v21   ;;  %v1480_v21 = vld [vmem:[%s3880_s3 + $0x178] sm:$0xff] }
  0xd3   : > { %v3300_v27 = vpop.permute.xlu1 %540  ;;  %v3302_v28 = vpop.permute.xlu0 %535 }
  0xd4   : > { %1669 = vperm.xlu1 %2594, %v1467_v25   ;;  %685 = vperm.xlu0 %2593, %v475_v26   ;;  %v488_v25 = vld [vmem:[%s3879_s2 + $0x188] sm:$0xff] }
  0xd7   : > { %v3310_v31 = vpop.permute.xlu1 %550  ;;  %v3312_v32 = vpop.permute.xlu0 %545 }
  0xd8   : > { %1674 = vperm.xlu1 %2594, %v1468_v29   ;;  %690 = vperm.xlu0 %2593, %v476_v30   ;;  %v1481_v30 = vld [vmem:[%s3880_s3 + $0x180] sm:$0xff] }
  0xdb   : > { %v3320_v36 = vpop.permute.xlu1 %560  ;;  %v3322_v37 = vpop.permute.xlu0 %555 }
  0xdc   : > { %1679 = vperm.xlu1 %2594, %v1469_v34   ;;  %695 = vperm.xlu0 %2593, %v477_v35   ;;  %v489_v34 = vld [vmem:[%s3879_s2 + $0x190] sm:$0xff] }
  0xdf   : > { %v3330_v40 = vpop.permute.xlu1 %570  ;;  %v3332_v41 = vpop.permute.xlu0 %565 }
  0xe0   : > { %1684 = vperm.xlu1 %2594, %v1470_v38   ;;  %700 = vperm.xlu0 %2593, %v478_v39   ;;  %v1482_v39 = vld [vmem:[%s3880_s3 + $0x188] sm:$0xff] }
  0xe3   : > { %v3340_v45 = vpop.permute.xlu1 %580  ;;  %v3342_v46 = vpop.permute.xlu0 %575 }
  0xe4   : > { %1689 = vperm.xlu1 %2594, %v1471_v43   ;;  %705 = vperm.xlu0 %2593, %v479_v44   ;;  %v490_v43 = vld [vmem:[%s3879_s2 + $0x198] sm:$0xff] }
  0xe7   : > { %v3350_v50 = vpop.permute.xlu1 %1504  ;;  %v3352_v51 = vpop.permute.xlu0 %1499 }
  0xe8   : > { %1694 = vperm.xlu1 %2594, %v1472_v47   ;;  %710 = vperm.xlu0 %2593, %v480_v49   ;;  %v1483_v49 = vld [vmem:[%s3880_s3 + $0x190] sm:$0xff] }
  0xeb   : > { %v3360_v54 = vpop.permute.xlu1 %1514  ;;  %v3362_v55 = vpop.permute.xlu0 %1509 }
  0xec   : > { %1699 = vperm.xlu1 %2594, %v1473_v52   ;;  %715 = vperm.xlu0 %2593, %v481_v53   ;;  %v491_v52 = vld [vmem:[%s3879_s2 + $0x1a0] sm:$0xff] }
  0xef   : > { %v3370_v58 = vpop.permute.xlu1 %1524  ;;  %v3372_v59 = vpop.permute.xlu0 %1519 }
  0xf0   : > { %1704 = vperm.xlu1 %2594, %v1474_v56   ;;  %720 = vperm.xlu0 %2593, %v482_v57   ;;  %v1484_v57 = vld [vmem:[%s3880_s3 + $0x198] sm:$0xff] }
  0xf3   : > { %v3380_v62 = vpop.permute.xlu1 %1534  ;;  %v3382_v63 = vpop.permute.xlu0 %1529 }
  0xf4   : > { %1709 = vperm.xlu1 %2594, %v1475_v60   ;;  %725 = vperm.xlu0 %2593, %v483_v61   ;;  %v492_v60 = vld [vmem:[%s3879_s2 + $0x1a8] sm:$0xff] }
  0xf7   : > { %v3390_v2 = vpop.permute.xlu1 %1544  ;;  %v3392_v3 = vpop.permute.xlu0 %1539 }
  0xf8   : > { %1714 = vperm.xlu1 %2594, %v1476_v0   ;;  %730 = vperm.xlu0 %2593, %v484_v1   ;;  %v1485_v1 = vld [vmem:[%s3880_s3 + $0x1a0] sm:$0xff] }
  0xfb   : > { %v3400_v6 = vpop.permute.xlu1 %1554  ;;  %v3402_v7 = vpop.permute.xlu0 %1549 }
  0xfc   : > { %1719 = vperm.xlu1 %2594, %v1477_v4   ;;  %735 = vperm.xlu0 %2593, %v485_v5   ;;  %v493_v4 = vld [vmem:[%s3879_s2 + $0x1b0] sm:$0xff] }
  0xff   : > { %v3410_v10 = vpop.permute.xlu1 %1564  ;;  %v3412_v11 = vpop.permute.xlu0 %1559 }
 0x100   : > { %1724 = vperm.xlu1 %2594, %v1478_v8   ;;  %740 = vperm.xlu0 %2593, %v486_v9   ;;  %v1486_v9 = vld [vmem:[%s3880_s3 + $0x1a8] sm:$0xff] }
 0x103   : > { %v3420_v17 = vpop.permute.xlu1 %1569  ;;  %v3422_v20 = vpop.permute.xlu0 %585 }
 0x104   : > { %1729 = vperm.xlu1 %2594, %v1479_v12   ;;  %745 = vperm.xlu0 %2593, %v487_v15   ;;  %v494_v12 = vld [vmem:[%s3879_s2 + $0x1b8] sm:$0xff] }
 0x107   : > { %v3430_v26 = vpop.permute.xlu1 %1574  ;;  %v3432_v29 = vpop.permute.xlu0 %590 }
 0x108   : > { %1734 = vperm.xlu1 %2594, %v1480_v21   ;;  %750 = vperm.xlu0 %2593, %v488_v25   ;;  %v1487_v25 = vld [vmem:[%s3880_s3 + $0x1b0] sm:$0xff] }
 0x10b   : > { %v3440_v35 = vpop.permute.xlu1 %1579  ;;  %v3442_v38 = vpop.permute.xlu0 %595 }
 0x10c   : > { %1739 = vperm.xlu1 %2594, %v1481_v30   ;;  %755 = vperm.xlu0 %2593, %v489_v34   ;;  %v495_v30 = vld [vmem:[%s3879_s2 + $0x1c0] sm:$0xff] }
 0x10f   : > { %v3450_v44 = vpop.permute.xlu1 %1584  ;;  %v3452_v47 = vpop.permute.xlu0 %600 }
 0x110   : > { %1744 = vperm.xlu1 %2594, %v1482_v39   ;;  %760 = vperm.xlu0 %2593, %v490_v43   ;;  %v1488_v43 = vld [vmem:[%s3880_s3 + $0x1b8] sm:$0xff] }
 0x113   : > { %v3460_v53 = vpop.permute.xlu1 %1589  ;;  %v3462_v56 = vpop.permute.xlu0 %605 }
 0x114   : > { %1749 = vperm.xlu1 %2594, %v1483_v49   ;;  %765 = vperm.xlu0 %2593, %v491_v52   ;;  %v496_v49 = vld [vmem:[%s3879_s2 + $0x1c8] sm:$0xff] }
 0x117   : > { %v3470_v61 = vpop.permute.xlu1 %1594  ;;  %v3472_v0 = vpop.permute.xlu0 %610 }
 0x118   : > { %1754 = vperm.xlu1 %2594, %v1484_v57   ;;  %770 = vperm.xlu0 %2593, %v492_v60   ;;  %v1489_v60 = vld [vmem:[%s3880_s3 + $0x1c0] sm:$0xff] }
 0x11b   : > { %v3480_v5 = vpop.permute.xlu1 %1599  ;;  %v3482_v8 = vpop.permute.xlu0 %615 }
 0x11c   : > { %1759 = vperm.xlu1 %2594, %v1485_v1   ;;  %775 = vperm.xlu0 %2593, %v493_v4   ;;  %v497_v1 = vld [vmem:[%s3879_s2 + $0x1d0] sm:$0xff] }
 0x11f   : > { %v3490_v15 = vpop.permute.xlu1 %1604  ;;  %v3492_v21 = vpop.permute.xlu0 %620 }
 0x120   : > { %3901 = vst [vmem:[#allocation13_spill] sm:$0xff] %v3490_v15  ;;  %1764 = vperm.xlu1 %2594, %v1486_v9   ;;  %780 = vperm.xlu0 %2593, %v494_v12   ;;  %v1491_v15 = vld [vmem:[%s3880_s3 + $0x1d0] sm:$0xff] }
 0x123   : > { %v3500_v34 = vpop.permute.xlu1 %1609  ;;  %v3502_v39 = vpop.permute.xlu0 %625 }
 0x124   : > { %3902 = vst [vmem:[#allocation14_spill] sm:$0xff] %v3502_v39  ;;  %1769 = vperm.xlu1 %2594, %v1487_v25   ;;  %785 = vperm.xlu0 %2593, %v495_v30   ;;  %v1490_v25 = vld [vmem:[%s3880_s3 + $0x1c8] sm:$0xff]  ;;  %v498_v30 = vld [vmem:[%s3879_s2 + $0x1d8] sm:$0xff] }
 0x127   : > { %v3510_v52 = vpop.permute.xlu1 %1614  ;;  %v3512_v57 = vpop.permute.xlu0 %630 }
 0x128   : > { %3903 = vst [vmem:[#allocation15_spill] sm:$0xff] %v3512_v57  ;;  %1774 = vperm.xlu1 %2594, %v1488_v43   ;;  %790 = vperm.xlu0 %2593, %v496_v49  }
 0x12b   : > { %v3520_v4 = vpop.permute.xlu1 %1619  ;;  %v3522_v9 = vpop.permute.xlu0 %635 }
 0x12c   : > { %3904 = vst [vmem:[#allocation16_spill] sm:$0xff] %v3520_v4  ;;  %3905 = vst [vmem:[#allocation17_spill] sm:$0xff] %v3522_v9  ;;  %1779 = vperm.xlu1 %2594, %v1489_v60   ;;  %795 = vperm.xlu0 %2593, %v497_v1  }
 0x12d   : > { %v2386_v12 = vpop.f32.mrb[0].mxu0 }
 0x12e   : > { %v1114_v43 = vpop.f32.mrb[1].mxu0  ;;  %v1123_v49 = vadd.f32 %v2386_v12, %v3270_v13  ;;  %v499_v13 = vld [vmem:[%s3879_s2 + $0x1e0] sm:$0xff] }
 0x12f   : > { %v1115_v48 = vadd.f32 %v1114_v43, %v3272_v14  ;;  %v2387_v57 = vpop.f32.mrb[2].mxu0  ;;  %v3532_v4 = vpop.permute.xlu1 %1624 }
 0x130   : > { %3906 = vst [vmem:[#allocation18_spill] sm:$0xff] %v3532_v4  ;;  %v1126_v60 = vadd.f32 %v2387_v57, %v3280_v18  ;;  %v3535_v1 = vpop.permute.xlu0 %640  ;;  %v1117_v39 = vpop.f32.mrb[3].mxu0  ;;  %1784 = vperm.xlu1 %2594, %v1490_v25   ;;  %800 = vperm.xlu0 %2593, %v498_v30   ;;  %v1371_v12 = vmax.f32 %v1123_v49, 0.0  ;;  %v500_v49 = vld [vmem:[%s3879_s2 + $0x1e8] sm:$0xff] }
 0x131   : > { %3907 = vst [vmem:[#allocation19_spill] sm:$0xff] %v3535_v1  ;;  %v1369_v42 = vmax.f32 %v1115_v48, 0.0  ;;  %v1118_v9 = vadd.f32 %v1117_v39, %v3282_v19  ;;  %v3544_v14 = vpop.f32.mrb[0].mxu1 }
 0x132   : > { %3908 = vst [vmem:[#allocation20_spill] sm:$0xff] %v3544_v14  ;;  %v3548_v43 = vpop.f32.mrb[1].mxu1  ;;  %v1372_v25 = vmax.f32 %v1126_v60, 0.0 }
 0x133   : > { %v1370_v18 = vmax.f32 %v1118_v9, 0.0  ;;  %v3546_v57 = vpop.permute.xlu1 %1629  ;;  %3910 = vst [vmem:[#allocation22_spill] sm:$0xff] %v3548_v43  ;;  %v3552_v19 = vpop.f32.mrb[2].mxu1  ;;  %v1817_v39 = vmul.f32 %v3352_v51, %v1369_v42  ;;  %v1492_v9 = vld [vmem:[%s3880_s3 + $0x1d8] sm:$0xff] }
 0x134   : > { %3909 = vst [vmem:[#allocation21_spill] sm:$0xff] %v3546_v57  ;;  %v3550_v48 = vpop.permute.xlu0 %645  ;;  %1789 = vperm.xlu1 %2594, %v1491_v15   ;;  %805 = vperm.xlu0 %2593, %v499_v13   ;;  %3912 = vst [vmem:[#allocation24_spill] sm:$0xff] %v3552_v19  ;;  %v3562_v60 = vpop.f32.mrb[3].mxu1  ;;  %v1819_v15 = vmul.f32 %v3362_v55, %v1371_v12 }
 0x135   : > { %3911 = vst [vmem:[#allocation23_spill] sm:$0xff] %v3550_v48  ;;  %v1818_v30 = vmul.f32 %v3350_v50, %v1370_v18  ;;  %v2390_v4 = vpop.f32.mrb[4].mxu0  ;;  %3913 = vst [vmem:[#allocation25_spill] sm:$0xff] %v3562_v60  ;;  %v1820_v18 = vmul.f32 %v3360_v54, %v1372_v25 }
 0x136   : > { %v1130_v14 = vpop.f32.mrb[5].mxu0  ;;  %v1139_v19 = vadd.f32 %v2390_v4, %v3302_v28  ;;  %v501_v28 = vld [vmem:[%s3879_s2 + $0x1f0] sm:$0xff] }
 0x137   : > { %v1881_v13 = vadd.f32 %v1818_v30, %v1817_v39  ;;  %v1131_v42 = vadd.f32 %v1130_v14, %v3292_v24  ;;  %v2391_v50 = vpop.f32.mrb[6].mxu0  ;;  %v3567_v51 = vpop.permute.xlu1 %1634  ;;  %v1493_v24 = vld [vmem:[%s3880_s3 + $0x1e0] sm:$0xff] }
 0x138   : > { %v3570_v43 = vpop.permute.xlu0 %650  ;;  %v1133_v48 = vpop.f32.mrb[7].mxu0  ;;  %1794 = vperm.xlu1 %2594, %v1492_v9   ;;  %810 = vperm.xlu0 %2593, %v500_v49   ;;  %v1142_v1 = vadd.f32 %v2391_v50, %v3300_v27  ;;  %v1375_v4 = vmax.f32 %v1139_v19, 0.0 }
 0x139   : > { %v1882_v57 = vadd.f32 %v1881_v13, %v1819_v15  ;;  %v1373_v60 = vmax.f32 %v1131_v42, 0.0  ;;  %v1134_v55 = vadd.f32 %v1133_v48, %v3290_v23  ;;  %v3585_v23 = vpop.f32.mrb[4].mxu1 }
 0x13a   : > { %v1376_v48 = vmax.f32 %v1142_v1, 0.0  ;;  %v3594_v19 = vpop.f32.mrb[5].mxu1  ;;  %v1823_v1 = vmul.f32 %v3382_v63, %v1375_v4  ;;  %v1495_v63 = vld [vmem:[%s3880_s3 + $0x1f0] sm:$0xff] }
 0x13b   : > { %v1883_v54 = vadd.f32 %v1882_v57, %v1820_v18  ;;  %v1821_v14 = vmul.f32 %v3372_v59, %v1373_v60  ;;  %v1374_v12 = vmax.f32 %v1134_v55, 0.0  ;;  %v3581_v25 = vpop.permute.xlu1 %1639  ;;  %v1494_v57 = vld [vmem:[%s3880_s3 + $0x1e8] sm:$0xff]  ;;  %v502_v59 = vld [vmem:[%s3879_s2 + $0x1f8] sm:$0xff]  ;;  %v3597_v15 = vpop.f32.mrb[6].mxu1 }
 0x13c   : > { %v3583_v39 = vpop.permute.xlu0 %655  ;;  %1799 = vperm.xlu1 %2594, %v1493_v24   ;;  %815 = vperm.xlu0 %2593, %v501_v28  }
 0x13d   : > { %v1884_v27 = vadd.f32 %v1883_v54, %v1821_v14  ;;  %v1822_v30 = vmul.f32 %v3370_v58, %v1374_v12  ;;  %v2394_v9 = vpop.f32.mrb[8].mxu0 }
 0x13e   : > { %v1155_v49 = vadd.f32 %v2394_v9, %v3322_v37  ;;  %v1146_v60 = vpop.f32.mrb[9].mxu0  ;;  %v1824_v37 = vmul.f32 %v3380_v62, %v1376_v48 }
 0x13f   : > { %v1885_v13 = vadd.f32 %v1884_v27, %v1822_v30  ;;  %v1147_v58 = vadd.f32 %v1146_v60, %v3312_v32  ;;  %v2395_v42 = vpop.f32.mrb[10].mxu0  ;;  %v3601_v50 = vpop.permute.xlu1 %1644  ;;  %v1496_v32 = vld [vmem:[%s3880_s3 + $0x1f8] sm:$0xff]  ;;  %v1950_v60 = vld [vmem:[#allocation3] sm:$0x1] }
 0x140   : > { %v1158_v18 = vadd.f32 %v2395_v42, %v3320_v36  ;;  %v3604_v55 = vpop.permute.xlu0 %660  ;;  %v1149_v24 = vpop.f32.mrb[11].mxu0  ;;  %1804 = vperm.xlu1 %2594, %v1494_v57   ;;  %820 = vperm.xlu0 %2593, %v502_v59   ;;  %v1379_v4 = vmax.f32 %v1155_v49, 0.0 }
 0x141   : > { %v1886_v28 = vadd.f32 %v1885_v13, %v1823_v1  ;;  %v1377_v54 = vmax.f32 %v1147_v58, 0.0  ;;  %v1150_v14 = vadd.f32 %v1149_v24, %v3310_v31  ;;  %v3614_v36 = vpop.f32.mrb[7].mxu1  ;;  %v2751_v13 = vmov 0.0|0.0  }
 0x142   : > { %v1380_v48 = vmax.f32 %v1158_v18, 0.0  ;;  %v3622_v1 = vpop.f32.mrb[8].mxu1  ;;  %2479 = vmatprep.subr.bf16.mxu1 %v2751_v13  ;;  %v1827_v58 = vmul.f32 %v3402_v7, %v1379_v4 }
 0x143   : > { %v1887_v12 = vadd.f32 %v1886_v28, %v1824_v37  ;;  %v1825_v27 = vmul.f32 %v3392_v3, %v1377_v54  ;;  %v1378_v30 = vmax.f32 %v1150_v14, 0.0  ;;  %v3617_v62 = vpop.permute.xlu1 %1649  ;;  %v3625_v3 = vpop.f32.mrb[9].mxu1  ;;  %2481 = vmatpush3.bf16.xpose.msra.mxu1 %v2918_v16 }
 0x144   : > { %v3619_v9 = vpop.permute.xlu0 %665  ;;  %1814 = vperm.xlu1 %2594, %v1496_v32   ;;  %1809 = vperm.xlu0 %2593, %v1495_v63   ;;  %v1828_v28 = vmul.f32 %v3400_v6, %v1380_v48 }
 0x145   : > { %v1888_v31 = vadd.f32 %v1887_v12, %v1825_v27  ;;  %v1826_v57 = vmul.f32 %v3390_v2, %v1378_v30  ;;  %v2398_v59 = vpop.f32.mrb[12].mxu0  ;;  %2482 = vmatprep.subr.bf16.mxu1 %v2751_v13 }
 0x146   : > { %v1162_v49 = vpop.f32.mrb[13].mxu0  ;;  %v1171_v18 = vadd.f32 %v2398_v59, %v3342_v46  ;;  %v3639_v46 = vpop.f32.mrb[10].mxu1 }
 0x147   : > { %v1889_v42 = vadd.f32 %v1888_v31, %v1826_v57  ;;  %v1163_v24 = vadd.f32 %v1162_v49, %v3332_v41  ;;  %v2399_v2 = vpop.f32.mrb[14].mxu0  ;;  %v3631_v37 = vpop.permute.xlu1 %1654 }
 0x148   : > { %v3635_v54 = vpop.permute.xlu0 %670  ;;  %v1165_v14 = vpop.f32.mrb[15].mxu0  ;;  %1953 = vperm.xlu0 %2593, %v1950_v60   ;;  %v1174_v7 = vadd.f32 %v2399_v2, %v3340_v45  ;;  %v1383_v12 = vmax.f32 %v1171_v18, 0.0 }
 0x149   : > { %v1890_v32 = vadd.f32 %v1889_v42, %v1827_v58  ;;  %v1381_v16 = vmax.f32 %v1163_v24, 0.0  ;;  %v1166_v63 = vadd.f32 %v1165_v14, %v3330_v40  ;;  %v3641_v41 = vpop.f32.mrb[11].mxu1 }
 0x14a   : > { %v1384_v57 = vmax.f32 %v1174_v7, 0.0  ;;  %v3649_v60 = vpop.f32.mrb[12].mxu1 }
 0x14b   : > { %v1891_v4 = vadd.f32 %v1890_v32, %v1828_v28  ;;  %v1829_v27 = vmul.f32 %v3412_v11, %v1381_v16  ;;  %v1382_v30 = vmax.f32 %v1166_v63, 0.0  ;;  %v3644_v6 = vpop.permute.xlu1 %1659  ;;  %v3652_v58 = vpop.f32.mrb[13].mxu1  ;;  %2484 = vmatpush3.bf16.xpose.msra.mxu1 %v2928_v22  ;;  %v1831_v11 = vmul.f32 %v3420_v17, %v1383_v12 }
 0x14c   : > { %v3646_v48 = vpop.permute.xlu0 %675  ;;  %2485 = vmatprep.subr.bf16.mxu1 %v2751_v13  ;;  %v1832_v32 = vmul.f32 %v3430_v26, %v1384_v57  ;;  %v3665_v7 = vpop.f32.mrb[14].mxu1 }
 0x14d   : > { %v1892_v31 = vadd.f32 %v1891_v4, %v1829_v27  ;;  %v1830_v59 = vmul.f32 %v3410_v10, %v1382_v30  ;;  %v2402_v45 = vpop.f32.mrb[16].mxu0  ;;  %v3668_v4 = vpop.f32.mrb[15].mxu1 }
 0x14e   : > { %v1187_v40 = vadd.f32 %v2402_v45, %v3442_v38  ;;  %v1178_v49 = vpop.f32.mrb[17].mxu0  ;;  %v3677_v45 = vpop.f32.mrb[16].mxu1 }
 0x14f   : > { %v1893_v42 = vadd.f32 %v1892_v31, %v1830_v59  ;;  %v1179_v18 = vadd.f32 %v1178_v49, %v3422_v20  ;;  %v2403_v24 = vpop.f32.mrb[18].mxu0  ;;  %v3657_v2 = vpop.permute.xlu1 %1664 }
 0x150   : > { %v1387_v10 = vmax.f32 %v1187_v40, 0.0  ;;  %v1190_v28 = vadd.f32 %v2403_v24, %v3452_v47  ;;  %v3661_v14 = vpop.permute.xlu0 %680  ;;  %v1181_v38 = vpop.f32.mrb[19].mxu0 }
 0x151   : > { %v1894_v16 = vadd.f32 %v1893_v42, %v1831_v11  ;;  %v1385_v22 = vmax.f32 %v1179_v18, 0.0  ;;  %v1182_v17 = vadd.f32 %v1181_v38, %v3432_v29  ;;  %v3680_v49 = vpop.f32.mrb[17].mxu1 }
 0x152   : > { %v1835_v20 = vmul.f32 %v3460_v53, %v1387_v10  ;;  %v1388_v63 = vmax.f32 %v1190_v28, 0.0 }
 0x153   : > { %v1895_v12 = vadd.f32 %v1894_v16, %v1832_v32  ;;  %v1833_v27 = vmul.f32 %v3440_v35, %v1385_v22  ;;  %v1386_v47 = vmax.f32 %v1182_v17, 0.0  ;;  %v3671_v30 = vpop.permute.xlu1 %1669  ;;  %2487 = vmatpush3.bf16.xpose.msra.mxu1 %v2945_v33  ;;  %v3691_v32 = vpop.f32.mrb[18].mxu1 }
 0x154   : > { %v1836_v31 = vmul.f32 %v3470_v61, %v1388_v63  ;;  %v3674_v26 = vpop.permute.xlu0 %685  ;;  %2488 = vmatprep.subr.bf16.mxu1 %v2751_v13  ;;  %v3694_v16 = vpop.f32.mrb[19].mxu1 }
 0x155   : > { %v1896_v57 = vadd.f32 %v1895_v12, %v1833_v27  ;;  %v1834_v29 = vmul.f32 %v3450_v44, %v1386_v47  ;;  %v2406_v59 = vpop.f32.mrb[20].mxu0  ;;  %v3914_v27 = vld [vmem:[#allocation13_spill] sm:$0xff] }
 0x156   : > { %v1203_v53 = vadd.f32 %v2406_v59, %v3482_v8  ;;  %v1194_v40 = vpop.f32.mrb[21].mxu0 }
 0x157   : > { %v1897_v35 = vadd.f32 %v1896_v57, %v1834_v29  ;;  %v1195_v11 = vadd.f32 %v1194_v40, %v3462_v56  ;;  %v2407_v42 = vpop.f32.mrb[22].mxu0  ;;  %v3684_v61 = vpop.permute.xlu1 %1674  ;;  %v3917_v40 = vld [vmem:[#allocation14_spill] sm:$0xff] }
 0x158   : > { %v1391_v18 = vmax.f32 %v1203_v53, 0.0  ;;  %v1206_v44 = vadd.f32 %v2407_v42, %v3492_v21  ;;  %v3688_v24 = vpop.permute.xlu0 %690  ;;  %v1197_v10 = vpop.f32.mrb[23].mxu0 }
 0x159   : > { %v1898_v8 = vadd.f32 %v1897_v35, %v1835_v20  ;;  %v1389_v28 = vmax.f32 %v1195_v11, 0.0  ;;  %v1198_v38 = vadd.f32 %v1197_v10, %v3472_v0  ;;  %v3703_v57 = vpop.f32.mrb[20].mxu1 }
 0x15a   : > { %v1839_v33 = vmul.f32 %v3500_v34, %v1391_v18  ;;  %v1392_v56 = vmax.f32 %v1206_v44, 0.0  ;;  %v3915_v34 = vld [vmem:[#allocation17_spill] sm:$0xff]  ;;  %v3706_v53 = vpop.f32.mrb[21].mxu1  ;;  %v3918_v18 = vld [vmem:[#allocation19_spill] sm:$0xff] }
 0x15b   : > { %v1837_v22 = vmul.f32 %v3480_v5, %v1389_v28  ;;  %v1899_v13 = vadd.f32 %v1898_v8, %v1836_v31  ;;  %v1390_v17 = vmax.f32 %v1198_v38, 0.0  ;;  %v3697_v63 = vpop.permute.xlu1 %1679  ;;  %v3916_v5 = vld [vmem:[#allocation11_spill] sm:$0xff] }
 0x15c   : > { %v1840_v21 = vmul.f32 %v3510_v52, %v1392_v56  ;;  %v3700_v12 = vpop.permute.xlu0 %695  ;;  %2490 = vmatpush3.bf16.xpose.msra.mxu1 %v3916_v5  ;;  %v3919_v56 = vld [vmem:[#allocation15_spill] sm:$0xff] }
 0x15d   : > { %v1900_v20 = vadd.f32 %v1899_v13, %v1837_v22  ;;  %v1838_v0 = vmul.f32 %v3914_v27, %v1390_v17  ;;  %v2410_v47 = vpop.f32.mrb[24].mxu0  ;;  %v3716_v13 = vpop.f32.mrb[22].mxu1  ;;  %v3920_v17 = vld [vmem:[#allocation21_spill] sm:$0xff] }
 0x15e   : > { %v1219_v29 = vadd.f32 %v2410_v47, %v3915_v34  ;;  %v1210_v59 = vpop.f32.mrb[25].mxu0  ;;  %v3921_v47 = vld [vmem:[#allocation16_spill] sm:$0xff] }
 0x15f   : > { %v1901_v31 = vadd.f32 %v1900_v20, %v1838_v0  ;;  %v1211_v35 = vadd.f32 %v1210_v59, %v3917_v40  ;;  %v2411_v11 = vpop.f32.mrb[26].mxu0  ;;  %v3710_v52 = vpop.permute.xlu1 %1684 }
 0x160   : > { %v1395_v42 = vmax.f32 %v1219_v29, 0.0  ;;  %v1222_v44 = vadd.f32 %v2411_v11, %v3918_v18  ;;  %v3713_v10 = vpop.permute.xlu0 %700  ;;  %v1213_v8 = vpop.f32.mrb[27].mxu0 }
 0x161   : > { %v1902_v28 = vadd.f32 %v1901_v31, %v1839_v33  ;;  %v1393_v38 = vmax.f32 %v1211_v35, 0.0  ;;  %v1214_v22 = vadd.f32 %v1213_v8, %v3919_v56  ;;  %v3719_v0 = vpop.f32.mrb[23].mxu1  ;;  %v3922_v31 = vld [vmem:[#allocation18_spill] sm:$0xff] }
 0x162   : > { %v1843_v27 = vmul.f32 %v3920_v17, %v1395_v42  ;;  %v1396_v20 = vmax.f32 %v1222_v44, 0.0  ;;  %v3728_v8 = vpop.f32.mrb[24].mxu1 }
 0x163   : > { %v1841_v34 = vmul.f32 %v3921_v47, %v1393_v38  ;;  %v1903_v59 = vadd.f32 %v1902_v28, %v1840_v21  ;;  %v1394_v29 = vmax.f32 %v1214_v22, 0.0  ;;  %v3722_v5 = vpop.permute.xlu1 %1689  ;;  %3923 = vst [vmem:[#allocation13_spill] sm:$0xff] %v3728_v8  ;;  %v3731_v56 = vpop.f32.mrb[25].mxu1  ;;  %v3925_v21 = vld [vmem:[#allocation23_spill] sm:$0xff] }
 0x164   : > { %v1844_v40 = vmul.f32 %v3567_v51, %v1396_v20  ;;  %v3725_v11 = vpop.permute.xlu0 %705  ;;  %3924 = vst [vmem:[#allocation17_spill] sm:$0xff] %v3731_v56 }
 0x165   : > { %v1904_v33 = vadd.f32 %v1903_v59, %v1841_v34  ;;  %v1842_v35 = vmul.f32 %v3922_v31, %v1394_v29  ;;  %v2414_v18 = vpop.f32.mrb[28].mxu0  ;;  %v3740_v31 = vpop.f32.mrb[26].mxu1 }
 0x166   : > { %v1235_v42 = vadd.f32 %v2414_v18, %v3583_v39  ;;  %v1226_v44 = vpop.f32.mrb[29].mxu0  ;;  %3926 = vst [vmem:[#allocation11_spill] sm:$0xff] %v3740_v31  ;;  %v3742_v39 = vpop.f32.mrb[27].mxu1 }
 0x167   : > { %v1905_v38 = vadd.f32 %v1904_v33, %v1842_v35  ;;  %v1227_v28 = vadd.f32 %v1226_v44, %v3925_v21  ;;  %v2415_v22 = vpop.f32.mrb[30].mxu0  ;;  %v3734_v17 = vpop.permute.xlu1 %1694 }
 0x168   : > { %v1238_v51 = vadd.f32 %v2415_v22, %v3604_v55  ;;  %v3737_v20 = vpop.permute.xlu0 %710  ;;  %v1229_v47 = vpop.f32.mrb[31].mxu0  ;;  %v1399_v18 = vmax.f32 %v1235_v42, 0.0 }
 0x169   : > { %v1906_v34 = vadd.f32 %v1905_v38, %v1843_v27  ;;  %v1397_v59 = vmax.f32 %v1227_v28, 0.0  ;;  %v1230_v29 = vadd.f32 %v1229_v47, %v3570_v43 }
 0x16a   : > { %v1400_v8 = vmax.f32 %v1238_v51, 0.0  ;;  %v1847_v43 = vmul.f32 %v3617_v62, %v1399_v18 }
 0x16b   : > { %v1845_v33 = vmul.f32 %v3581_v25, %v1397_v59  ;;  %v1907_v35 = vadd.f32 %v1906_v34, %v1844_v40  ;;  %v1398_v44 = vmax.f32 %v1230_v29, 0.0  ;;  %v3745_v21 = vpop.permute.xlu1 %1699 }
 0x16c   : > { %v716_v55 = vpop.permute.xlu0 %715  ;;  %v1848_v40 = vmul.f32 %v3631_v37, %v1400_v8 }
 0x16d   : > { %v1908_v22 = vadd.f32 %v1907_v35, %v1845_v33  ;;  %v1846_v56 = vmul.f32 %v3601_v50, %v1398_v44  ;;  %v2418_v27 = vpop.f32.mrb[32].mxu0 }
 0x16e   : > { %v1242_v38 = vpop.f32.mrb[33].mxu0  ;;  %v1251_v47 = vadd.f32 %v2418_v27, %v3646_v48 }
 0x16f   : > { %v1909_v28 = vadd.f32 %v1908_v22, %v1846_v56  ;;  %v1243_v42 = vadd.f32 %v1242_v38, %v3619_v9  ;;  %v2419_v31 = vpop.f32.mrb[34].mxu0  ;;  %v1705_v25 = vpop.permute.xlu1 %1704  ;;  %v3927_v9 = vld [vmem:[#allocation22_spill] sm:$0xff]  ;;  %v3928_v38 = vld [vmem:[#allocation25_spill] sm:$0xff] }
 0x170   : > { %v721_v34 = vpop.permute.xlu0 %720  ;;  %v1245_v59 = vpop.f32.mrb[35].mxu0  ;;  %v1254_v33 = vadd.f32 %v2419_v31, %v3661_v14  ;;  %v1403_v35 = vmax.f32 %v1251_v47, 0.0  ;;  %v1259_v44 = vadd.f32 %v3927_v9, %v3674_v26  ;;  %v1278_v9 = vadd.f32 %v3614_v36, %v3737_v20 }
 0x171   : > { %v1910_v51 = vadd.f32 %v1909_v28, %v1847_v43  ;;  %v1401_v29 = vmax.f32 %v1243_v42, 0.0  ;;  %v1246_v50 = vadd.f32 %v1245_v59, %v3635_v54  ;;  %v1262_v43 = vadd.f32 %v3928_v38, %v3688_v24  ;;  %v3930_v24 = vld [vmem:[#allocation24_spill] sm:$0xff] }
 0x172   : > { %v1404_v37 = vmax.f32 %v1254_v33, 0.0  ;;  %v1851_v14 = vmul.f32 %v3671_v30, %v1403_v35  ;;  %v1405_v28 = vmax.f32 %v1259_v44, 0.0  ;;  %v2753_v59 = vmov 0.0  }
 0x173   : > { %v1849_v62 = vmul.f32 %v3644_v6, %v1401_v29  ;;  %v1911_v56 = vadd.f32 %v1910_v51, %v1848_v40  ;;  %v1402_v18 = vmax.f32 %v1246_v50, 0.0  ;;  %v1710_v48 = vpop.permute.xlu1 %1709  ;;  %v3929_v6 = vld [vmem:[#allocation20_spill] sm:$0xff]  ;;  %2464 = vmatprep.mubr.msk.f32.mxu1 %vm2752_vm2, %v2753_v59  ;;  %v1406_v51 = vmax.f32 %v1262_v43, 0.0 }
 0x174   : > { %v726_v22 = vpop.permute.xlu0 %725  ;;  %v1267_v47 = vadd.f32 %v3929_v6, %v3700_v12  ;;  %v1852_v40 = vmul.f32 %v3684_v61, %v1404_v37  ;;  %v1270_v29 = vadd.f32 %v3930_v24, %v3713_v10  ;;  %v1275_v12 = vadd.f32 %v3594_v19, %v3725_v11 }
 0x175   : > { %v1912_v27 = vadd.f32 %v1911_v56, %v1849_v62  ;;  %v1850_v8 = vmul.f32 %v3657_v2, %v1402_v18  ;;  %v1853_v2 = vmul.f32 %v3697_v63, %v1405_v28  ;;  %v1854_v62 = vmul.f32 %v3710_v52, %v1406_v51 }
 0x176   : > { %v1407_v35 = vmax.f32 %v1267_v47, 0.0  ;;  %v1408_v56 = vmax.f32 %v1270_v29, 0.0  ;;  %v1409_v10 = vmax.f32 %v1275_v12, 0.0  ;;  %v1410_v52 = vmax.f32 %v1278_v9, 0.0 }
 0x177   : > { %v1913_v54 = vadd.f32 %v1912_v27, %v1850_v8  ;;  %v1715_v31 = vpop.permute.xlu1 %1714  ;;  %v1283_v8 = vadd.f32 %v3585_v23, %v716_v55  ;;  %v1286_v19 = vadd.f32 %v3597_v15, %v721_v34  ;;  %v1291_v20 = vadd.f32 %v3625_v3, %v726_v22 }
 0x178   : > { %v731_v42 = vpop.permute.xlu0 %730  ;;  %v1855_v18 = vmul.f32 %v3722_v5, %v1407_v35  ;;  %v1856_v37 = vmul.f32 %v3734_v17, %v1408_v56  ;;  %v1857_v43 = vmul.f32 %v3745_v21, %v1409_v10  ;;  %v1858_v28 = vmul.f32 %v1705_v25, %v1410_v52 }
 0x179   : > { %v1914_v26 = vadd.f32 %v1913_v54, %v1851_v14  ;;  %v1411_v54 = vmax.f32 %v1283_v8, 0.0  ;;  %v1412_v6 = vmax.f32 %v1286_v19, 0.0  ;;  %v1294_v17 = vadd.f32 %v3641_v41, %v731_v42 }
 0x17a   : > { %v1413_v59 = vmax.f32 %v1291_v20, 0.0 }
 0x17b   : > { %v1915_v30 = vadd.f32 %v1914_v26, %v1852_v40  ;;  %v1720_v33 = vpop.permute.xlu1 %1719  ;;  %v1859_v47 = vmul.f32 %v1710_v48, %v1411_v54  ;;  %v1860_v21 = vmul.f32 %v1715_v31, %v1412_v6  ;;  %v1414_v51 = vmax.f32 %v1294_v17, 0.0 }
 0x17c   : > { %v736_v50 = vpop.permute.xlu0 %735 }
 0x17d   : > { %v1916_v61 = vadd.f32 %v1915_v30, %v1853_v2  ;;  %v1299_v15 = vadd.f32 %v3622_v1, %v736_v50  ;;  %v1861_v2 = vmul.f32 %v1720_v33, %v1413_v59 }
 0x17f   : > { %v1917_v63 = vadd.f32 %v1916_v61, %v1854_v62  ;;  %v1725_v44 = vpop.permute.xlu1 %1724  ;;  %v1415_v22 = vmax.f32 %v1299_v15, 0.0 }
 0x180   : > { %v741_v27 = vpop.permute.xlu0 %740  ;;  %v1862_v48 = vmul.f32 %v1725_v44, %v1414_v51 }
 0x181   : > { %v1918_v38 = vadd.f32 %v1917_v63, %v1855_v18  ;;  %v1302_v25 = vadd.f32 %v3639_v46, %v741_v27 }
 0x183   : > { %v1919_v11 = vadd.f32 %v1918_v38, %v1856_v37  ;;  %v1730_v14 = vpop.permute.xlu1 %1729  ;;  %v1416_v42 = vmax.f32 %v1302_v25, 0.0 }
 0x184   : > { %v746_v5 = vpop.permute.xlu0 %745  ;;  %v1863_v35 = vmul.f32 %v1730_v14, %v1415_v22 }
 0x185   : > { %v1920_v36 = vadd.f32 %v1919_v11, %v1857_v43  ;;  %v1307_v30 = vadd.f32 %v3652_v58, %v746_v5 }
 0x187   : > { %v1921_v40 = vadd.f32 %v1920_v36, %v1858_v28  ;;  %v1735_v23 = vpop.permute.xlu1 %1734  ;;  %v1417_v50 = vmax.f32 %v1307_v30, 0.0 }
 0x188   : > { %v751_v55 = vpop.permute.xlu0 %750  ;;  %v1864_v61 = vmul.f32 %v1735_v23, %v1416_v42 }
 0x189   : > { %v1922_v26 = vadd.f32 %v1921_v40, %v1859_v47  ;;  %v1310_v62 = vadd.f32 %v3668_v4, %v751_v55 }
 0x18b   : > { %v1923_v34 = vadd.f32 %v1922_v26, %v1860_v21  ;;  %v1740_v24 = vpop.permute.xlu1 %1739  ;;  %v1418_v18 = vmax.f32 %v1310_v62, 0.0 }
 0x18c   : > { %v756_v29 = vpop.permute.xlu0 %755  ;;  %v1865_v9 = vmul.f32 %v1740_v24, %v1417_v50 }
 0x18d   : > { %v1924_v3 = vadd.f32 %v1923_v34, %v1861_v2  ;;  %v1315_v33 = vadd.f32 %v3649_v60, %v756_v29 }
 0x18f   : > { %v1925_v41 = vadd.f32 %v1924_v3, %v1862_v48  ;;  %v1745_v31 = vpop.permute.xlu1 %1744  ;;  %v1419_v27 = vmax.f32 %v1315_v33, 0.0 }
 0x190   : > { %v761_v12 = vpop.permute.xlu0 %760  ;;  %v1866_v10 = vmul.f32 %v1745_v31, %v1418_v18 }
 0x191   : > { %v1926_v1 = vadd.f32 %v1925_v41, %v1863_v35  ;;  %v1318_v46 = vadd.f32 %v3665_v7, %v761_v12 }
 0x193   : > { %v1927_v56 = vadd.f32 %v1926_v1, %v1864_v61  ;;  %v1750_v63 = vpop.permute.xlu1 %1749  ;;  %v1420_v37 = vmax.f32 %v1318_v46, 0.0 }
 0x194   : > { %v766_v44 = vpop.permute.xlu0 %765  ;;  %v1867_v38 = vmul.f32 %v1750_v63, %v1419_v27 }
 0x195   : > { %v1928_v58 = vadd.f32 %v1927_v56, %v1865_v9  ;;  %v1323_v4 = vadd.f32 %v3680_v49, %v766_v44 }
 0x197   : > { %v1929_v8 = vadd.f32 %v1928_v58, %v1866_v10  ;;  %v1755_v52 = vpop.permute.xlu1 %1754  ;;  %v1421_v60 = vmax.f32 %v1323_v4, 0.0 }
 0x198   : > { %v1868_v43 = vmul.f32 %v1755_v52, %v1420_v37  ;;  %v771_v19 = vpop.permute.xlu0 %770 }
 0x199   : > { %v1930_v11 = vadd.f32 %v1929_v8, %v1867_v38  ;;  %v1326_v7 = vadd.f32 %v3694_v16, %v771_v19 }
 0x19b   : > { %v1931_v14 = vadd.f32 %v1930_v11, %v1868_v43  ;;  %v1760_v5 = vpop.permute.xlu1 %1759  ;;  %v1422_v36 = vmax.f32 %v1326_v7, 0.0  ;;  %v3933_v11 = vld [vmem:[#allocation11_spill] sm:$0xff] }
 0x19c   : > { %v1869_v54 = vmul.f32 %v1760_v5, %v1421_v60  ;;  %v776_v28 = vpop.permute.xlu0 %775 }
 0x19d   : > { %v1331_v6 = vadd.f32 %v3677_v45, %v776_v28 }
 0x19e   : > { %v1932_v20 = vadd.f32 %v1931_v14, %v1869_v54 }
 0x19f   : > { %v1765_v47 = vpop.permute.xlu1 %1764  ;;  %v1423_v17 = vmax.f32 %v1331_v6, 0.0 }
 0x1a0   : > { %v1870_v40 = vmul.f32 %v1765_v47, %v1422_v36  ;;  %v781_v49 = vpop.permute.xlu0 %780  ;;  %v1956_v47 = vlaneseq }
 0x1a1   : > { %v1334_v55 = vadd.f32 %v3691_v32, %v781_v49 }
 0x1a2   : > { %v1933_v23 = vadd.f32 %v1932_v20, %v1870_v40 }
 0x1a3   : > { %v1770_v26 = vpop.permute.xlu1 %1769  ;;  %v1424_v15 = vmax.f32 %v1334_v55, 0.0  ;;  %v3934_v55 = vld [vmem:[#allocation12_spill] sm:$0xff] }
 0x1a4   : > { %v1871_v59 = vmul.f32 %v1770_v26, %v1423_v17  ;;  %v786_v21 = vpop.permute.xlu0 %785  ;;  %v1957_v17 = vshrl.u32 %v1956_v47, 7  ;;  %v1990_v26 = vrot.slane %v3934_v55, 4 }
 0x1a5   : > { %v1339_v34 = vadd.f32 %v3706_v53, %v786_v21 }
 0x1a6   : > { %v1934_v16 = vadd.f32 %v1933_v23, %v1871_v59  ;;  %v1958_v59 = vsub.s32 0, %v1957_v17 }
 0x1a7   : > { %v1775_v51 = vpop.permute.xlu1 %1774  ;;  %v1425_v24 = vmax.f32 %v1339_v34, 0.0  ;;  %v1991_v34 = vadd.f32 %v1990_v26, %v3934_v55 }
 0x1a8   : > { %v1872_v2 = vmul.f32 %v1775_v51, %v1424_v15  ;;  %v791_v25 = vpop.permute.xlu0 %790 }
 0x1a9   : > { %v1342_v45 = vadd.f32 %v3719_v0, %v791_v25  ;;  %v3931_v0 = vld [vmem:[#allocation17_spill] sm:$0xff] }
 0x1aa   : > { %v1935_v29 = vadd.f32 %v1934_v16, %v1872_v2 }
 0x1ab   : > { %v1780_v3 = vpop.permute.xlu1 %1779  ;;  %v1426_v30 = vmax.f32 %v1342_v45, 0.0 }
 0x1ac   : > { %v1873_v22 = vmul.f32 %v1780_v3, %v1425_v24  ;;  %v796_v48 = vpop.permute.xlu0 %795  ;;  %v1992_v24 = vrot.slane %v1991_v34, 2 }
 0x1ad   : > { %v1347_v32 = vadd.f32 %v3703_v57, %v796_v48 }
 0x1ae   : > { %v1936_v41 = vadd.f32 %v1935_v29, %v1873_v22  ;;  %v1993_v3 = vadd.f32 %v1992_v24, %v1991_v34 }
 0x1af   : > { %v1785_v42 = vpop.permute.xlu1 %1784  ;;  %v1427_v31 = vmax.f32 %v1347_v32, 0.0 }
 0x1b0   : > { %v1874_v35 = vmul.f32 %v1785_v42, %v1426_v30  ;;  %v801_v62 = vpop.permute.xlu0 %800  ;;  %v1994_v22 = vrot.slane %v1993_v3, 1 }
 0x1b1   : > { %v1350_v53 = vadd.f32 %v3716_v13, %v801_v62  ;;  %v3932_v13 = vld [vmem:[#allocation13_spill] sm:$0xff] }
 0x1b2   : > { %v1937_v12 = vadd.f32 %v1936_v41, %v1874_v35  ;;  %v1995_v48 = vadd.f32 %v1994_v22, %v1993_v3 }
 0x1b3   : > { %v1790_v1 = vpop.permute.xlu1 %1789  ;;  %v1428_v33 = vmax.f32 %v1350_v53, 0.0 }
 0x1b4   : > { %v1875_v50 = vmul.f32 %v1790_v1, %v1427_v31  ;;  %v806_v61 = vpop.permute.xlu0 %805  ;;  %v1996_v32 = vmax.f32 %v1995_v48, 1e-24 }
 0x1b5   : > { %v1355_v56 = vadd.f32 %v3931_v0, %v806_v61 }
 0x1b6   : > { %v1938_v46 = vadd.f32 %v1937_v12, %v1875_v50 }
 0x1b7   : > { %v1795_v18 = vpop.permute.xlu1 %1794  ;;  %v1429_v44 = vmax.f32 %v1355_v56, 0.0 }
 0x1b8   : > { %v1876_v9 = vmul.f32 %v1795_v18, %v1428_v33  ;;  %v811_v63 = vpop.permute.xlu0 %810 }
 0x1b9   : > { %v1358_v57 = vadd.f32 %v3742_v39, %v811_v63  ;;  %v2754_v63 = vmov (!%p2317_p4), 0.0  }
 0x1ba   : > { %v1939_v58 = vadd.f32 %v1938_v46, %v1876_v9  ;;  %v1999_v46 = vld [vmem:[#allocation2] sm:$0x1]  ;;  %2467 = vmatprep.subr.bf16.mxu0 (!%p2317_p4), %v2754_v63  ;;  %2475 = vmatprep.mubr.msk.bf16.mxu0 (!%p2317_p4), %vm2755_vm6, %v2754_v63 }
 0x1bb   : > { %v1800_v27 = vpop.permute.xlu1 %1799  ;;  %v1430_v4 = vmax.f32 %v1358_v57, 0.0  ;;  %v2633_v9 = vld [vmem:[%s3882_s5] sm:$0xff] (!%p2317_p4)   ;;  %v2636_v57 = vld [vmem:[%s3882_s5 + $0x18] sm:$0xff] (!%p2317_p4)  }
 0x1bc   : > { %v1877_v10 = vmul.f32 %v1800_v27, %v1429_v44  ;;  %v816_v37 = vpop.permute.xlu0 %815  ;;  %2468 = vmatpush3.bf16.msra.mxu0 (!%p2317_p4), %v2633_v9  ;;  %v2634_v44 = vld [vmem:[%s3882_s5 + $0x8] sm:$0xff] (!%p2317_p4)  }
 0x1bd   : > { %v1363_v38 = vadd.f32 %v3932_v13, %v816_v37  ;;  %2469 = vmatprep.subr.bf16.mxu0 (!%p2317_p4), %v2754_v63  ;;  %v2087_v37 = vld [vmem:[%s3883_s6] sm:$0x1] (!%p2317_p4) }
 0x1be   : > { %v1940_v8 = vadd.f32 %v1939_v58, %v1877_v10  ;;  %v2635_v58 = vld [vmem:[%s3882_s5 + $0x10] sm:$0xff] (!%p2317_p4)  }
 0x1bf   : > { %v1805_v52 = vpop.permute.xlu1 %1804  ;;  %v1431_v14 = vmax.f32 %v1363_v38, 0.0 }
 0x1c0   : > { %v1878_v43 = vmul.f32 %v1805_v52, %v1430_v4  ;;  %v821_v19 = vpop.permute.xlu0 %820  ;;  %2470 = vmatpush3.bf16.msra.mxu0 (!%p2317_p4), %v2634_v44 }
 0x1c1   : > { %v1366_v60 = vadd.f32 %v3933_v11, %v821_v19  ;;  %2471 = vmatprep.subr.bf16.mxu0 (!%p2317_p4), %v2754_v63 }
 0x1c2   : > { %v1941_v7 = vadd.f32 %v1940_v8, %v1878_v43 }
 0x1c3   : > { %v1432_v5 = vmax.f32 %v1366_v60, 0.0  ;;  %v1815_v54 = vpop.permute.xlu1 %1814 }
 0x1c4   : > { %v1810_v28 = vpop.permute.xlu0 %1809  ;;  %2472 = vmatpush3.bf16.msra.mxu0 (!%p2317_p4), %v2635_v58 }
 0x1c5   : > { %v1879_v36 = vmul.f32 %v1810_v28, %v1431_v14  ;;  %v1880_v20 = vmul.f32 %v1815_v54, %v1432_v5  ;;  %2473 = vmatprep.subr.bf16.mxu0 (!%p2317_p4), %v2754_v63 }
 0x1c7   : > { %v1942_v39 = vadd.f32 %v1941_v7, %v1879_v36 }
 0x1c8   : > { %v1954_v15 = vpop.permute.xlu0 %1953  ;;  %2474 = vmatpush3.bf16.msra.mxu0 (!%p2317_p4), %v2636_v57 }
 0x1c9   : > { %v1943_v6 = vadd.f32 %v1942_v39, %v1880_v20  ;;  %v1959_v2 = vrot.slane %v1954_v15, %v1958_v59 }
 0x1cb   : > { %v1944_v40 = vrot.slane %v1943_v6, 4 }
 0x1cd   : > { %v1945_v49 = vadd.f32 %v1944_v40, %v1943_v6 }
 0x1cf   : > { %v1946_v23 = vrot.slane %v1945_v49, 2 }
 0x1d1   : > { %v1947_v21 = vadd.f32 %v1946_v23, %v1945_v49 }
 0x1d3   : > { %v1948_v16 = vrot.slane %v1947_v21, 1 }
 0x1d5   : > { %v1949_v51 = vadd.f32 %v1948_v16, %v1947_v21 }
 0x1d7   : > { %v1960_v25 = vadd.f32 %v1959_v2, %v1949_v51 }
 0x1d9   : > { %v1962_v29 = vmin.f32 %v1960_v25, 20.0  ;;  %vm1961_vm4 = vcmp.gt.f32.partialorder %v1960_v25, 20.0 }
 0x1db   : > { %v1963_v45 = vmul.f32 1.442695, %v1962_v29 }
 0x1dd   : > { %2627 = vpow2.f32 %v1963_v45 }
 0x1e7   : > { %v2628_v30 = vpop.eup %2627 }
 0x1e8   : > { %v1965_v41 = vadd.f32 1.0, %v2628_v30  ;;  %v1968_v42 = vmul.f32 -0.5, %v2628_v30  ;;  %v1971_v62 = vand.u32 2147483647, %v2628_v30 }
 0x1ea   : > { %2629 = vlog2.f32 %v1965_v41  ;;  %v1969_v35 = vadd.f32 1.0, %v1968_v42  ;;  %vm1972_vm3 = vcmp.lt.f32.partialorder %v1971_v62, 0.0004427343 }
 0x1eb   : > { %2631 = vrsqrt.f32 %v1996_v32 }
 0x1ec   : > { %v1970_v53 = vmul.f32 %v2628_v30, %v1969_v35 }
 0x1f4   : > { %v2630_v31 = vpop.eup %2629 }
 0x1f5   : > { %v1967_v12 = vmul.f32 0.6931472, %v2630_v31  ;;  %v2632_v1 = vpop.eup %2631 }
 0x1f7   : > { %v1973_v50 = vsel %vm1972_vm3, %v1970_v53, %v1967_v12 }
 0x1f8   : > { %v1974_v61 = vsel %vm1961_vm4, %v1960_v25, %v1973_v50 }
 0x1f9   : > { %v1998_v33 = vmul.f32 %v2632_v1, %v1974_v61 }
 0x1fb   : > { %2465 = vmatmul.mubr.f32.vlgmr.msra.gmra.mrb[28].mxu1 %v1998_v33 }
 0x2cb   : > { %2076 = sbr.rel (%p2317_p4) target bundleno = 946 (0x3b2), region = 94 }
 0x2ce   : > { %v2066_v0 = vpop.f32.mrb[28].mxu1 }
 0x2cf   : > { %v2070_v56 = vadd.f32 %v2066_v0, %v1999_v46  ;;  %v2466_v18 = vpop.f32.mrb[29].mxu1 }
 0x2d1   : > { %2072 = vst.msk [vmem:[#allocation2] sm:$0x1] %vm2071_vm5, %v2070_v56 }
 0x2d8   : > { %v2077_v27 = vld [vmem:[#allocation2] sm:$0x1] }
 0x2d9   : > { %v2078_v10 = vpack.c.bf16 %v2077_v27, %v2077_v27 }
 0x2db   : > { %2476 = vmatmul.mubr.msk.bf16.vlgmr.msra.gmra.mrb[0].mxu0 %vm983_vm1, %v2078_v10 }
 0x3ae   : > { %v2149_v4 = vpop.f32.mrb[0].mxu0 }
 0x3af   : > { %v2150_v8 = vadd.f32 %v2149_v4, %v2087_v37  ;;  %v2477_v13 = vpop.f32.mrb[1].mxu0 }
 0x3b0   : > { %v2152_v38 = vpop.f32.mrb[2].mxu0 }
 0x3b1   : > { %2155 = vst [vmem:[%s2907_s13] sm:$0x1] %v2150_v8  ;;  %v2478_v52 = vpop.f32.mrb[3].mxu0 }
 0x3b2 PF: > { %s2323_s16 = sshll.u32 %s2735_s9, 4  ;;  %s2169_s21 = sshll.u32 %s2907_s13, 4  ;;  %s2170_s21 = int_to_ptr.vmem [resolvable:$true] %s2169_s21 }
 0x3b3   : > { %s3821_s17 = scalar_lea.hbm %s3884_s7, %s2323_s16  ;;  %s3935_s15 = sand.u32 1, %s2715_s27  }
 0x3b4   : > { %s2157_s12 = scalar_lea.sflag [#allocation6], %s3935_s15  ;;  %s2637_s29 = scalar_lea.vmem %s2170_s21, 16 }
 0x3b5   : > { %p2638_p5 = scmp.ne.s32.totalorder %s2170_s21, %s2637_s29  ;;  %s2756_s22 = smov [#allocation5]  }
 0x3b6   : > { %s2641_s8 = sshll.u32 %s2756_s22, 4  ;;  %s2642_s8 = int_to_ptr.vmem [resolvable:$false] %s2641_s8 }
 0x3b7   : > { %p2639_p6 = pnand %p2638_p5, %p2872_p7  ;;  %s2643_s0 = scalar_lea.vmem %s2642_s8, 32 }
 0x3b8   : > { %p2644_p9 = scmp.lt.s32.totalorder %s2170_s21, %s2642_s8  ;;  %p2645_p10 = scmp.lt.s32.totalorder %s2643_s0, %s2637_s29 }
 0x3b9   : > { %p2640_p8 = pneg %p2639_p6 }
 0x3ba   : > { %p2646_p11 = por %p2645_p10, %p2644_p9 }
 0x3bc   : > { %p2647_p13 = pnand %p2646_p11, %p2640_p8 }
 0x3be   : > { %2650 = shalt.err (!%p2647_p13)
}
 0x3bf   : > { %s2651_s9 = scalar_lea.hbm %s3821_s17, 16  ;;  %s2655_s19 = scalar_lea.hbm %s3884_s7, 32 }
 0x3c0   : > { %p2652_p0 = scmp.ne.s32.totalorder %s3821_s17, %s2651_s9  ;;  %p2656_p3 = scmp.lt.u32.totalorder %s3821_s17, %s3884_s7 }
 0x3c1   : > { %p2657_p4 = scmp.lt.u32.totalorder %s2655_s19, %s2651_s9  ;;  %p2659_p6 = scmp.lt.u32.totalorder %s2651_s9, %s3821_s17 }
 0x3c2   : > { %p2653_p1 = pnand %p2652_p0, %p2872_p7 }
 0x3c3   : > { %p2658_p5 = por %p2657_p4, %p2656_p3 }
 0x3c4   : > { %p2654_p2 = pneg %p2653_p1 }
 0x3c5   : > { %p2660_p8 = por %p2659_p6, %p2658_p5 }
 0x3c7   : > { %p2661_p9 = pnand %p2660_p8, %p2654_p2 }
 0x3c9   : > { %2664 = shalt.err (!%p2661_p9)
}
 0x3ca   : > { %2499 = dma.vmem_to_hbm [thread:$0]  (%p2872_p7), %s2170_s21, 16, %s3821_s17, %s2157_s12  }
 0x3cb PF: > { %p2505_p10 = scmp.ge.s32.totalorder %s2747_s11, 2  ;;  %s2181_s18 = sand.u32 1, %s2711_s26  }
 0x3cc   : > { %s2182_s15 = scalar_lea.sflag [#allocation6], %s2181_s18 }
 0x3cd   : > { %p2502_p11 = pnand %p2505_p10, %p2880_p12 }
 0x3cf   : > { %2706 = dma.done.wait (!%p2502_p11), %s2182_s15, 16  }
 0x3d0   : > { %2708 = vsyncadd (!%p2502_p11), %s2182_s15, 4294967280  ;;  %s22_s11 = sadd.s32 1, %s2747_s11   ;;  %s3936_s9 = sld [smem:[#allocation8_spill]] }
 0x3d1   : > { %p19_p13 = scmp.ge.s32.totalorder %s22_s11, 6   ;;  %s3937_s20 = sld [smem:[#allocation9_spill]] }
 0x3d2   : > { %s3938_s4 = sld [smem:[#allocation10_spill]]  ;;  %s3939_s26 = smov %s2715_s27 }
 0x3d3   : > { %s3940_s27 = smov %s2719_s28  ;;  %s3941_s28 = smov %s2885_s24 }
 0x3d4   : > { %s3942_s29 = smov %s2727_s30  ;;  %s3943_s30 = smov %s2888_s25 }
 0x3d5   : > { %s3944_s8 = smov %s2739_s10  ;;  %21 = sbr.rel (!%p19_p13) target bundleno = 9 (0x9), region = 134 }
 0x3d7   : > { %s3945_s10 = smov %s3937_s20 }
 0x3dc   :  { %2186 = vsyncpa [#allocation6], 1 }
 0x3dd   :  { %2188 = vsyncpa [#allocation6 + $0x1], 1 }

</bundles_post_ra>
